<compile_context>
chip_gen: v7x
topology: tpu7x:2x2x1
jax: 0.10.0
libtpu: 0.0.40
codegen_flags: <defaults>
</compile_context>

<pallas_src>
import functools

import jax
import jax.numpy as jnp
from jax import lax
from jax.experimental import pallas as pl
from jax.experimental.pallas import tpu as pltpu


def _vmem_capacity_bytes():
    """Generation-aware VMEM capacity (v5e/v6e: 128 MiB, v7x: 64 MiB/TC)."""
    try:
        cap = int(pltpu.get_tpu_info().vmem_capacity_bytes)
        if cap > 0:
            return cap
    except Exception:
        pass
    return 64 * 1024 * 1024  # conservative default (v7x per-TC size)


# ---------------------------------------------------------------------------
# Fused single-pass kernel: mean -> 7x7 conv + BN (folded) + sigmoid -> scale.
# ---------------------------------------------------------------------------
def _fused_spatial_gate_kernel(params_ref, x_ref, o_ref, pad_ref, *, H, W, K, inv_c):
    # params_ref: SMEM (K*K + 1,) f32; [:K*K] = bn_scale * conv_w (row-major),
    #             [K*K] = folded BN bias.
    # x_ref / o_ref: (C, H, W) block for one batch element.
    # pad_ref: VMEM (H+K-1, W+K-1) f32 scratch for the zero-padded mean map.
    pad = (K - 1) // 2
    x = x_ref[...].astype(jnp.float32)                      # (C, H, W)

    # (1) MeanConv: channel mean with fixed 1/C taps (baked-in constant).
    m = jnp.sum(x, axis=0) * inv_c                          # (H, W)

    # (2) zero-padded 7x7 conv with BN folded into the taps, then sigmoid.
    pad_ref[...] = jnp.zeros((H + K - 1, W + K - 1), jnp.float32)
    pad_ref[pad:pad + H, pad:pad + W] = m
    acc = jnp.zeros((H, W), jnp.float32)
    for ky in range(K):
        for kx in range(K):
            acc = acc + params_ref[ky * K + kx] * pad_ref[ky:ky + H, kx:kx + W]
    gate = jax.nn.sigmoid(acc + params_ref[K * K])          # (H, W)

    # (3) broadcast gate over channels and scale x (single HBM write of y).
    o_ref[...] = (x * gate[None, :, :]).astype(o_ref.dtype)


def _spatial_gate_fused(x, params, *, K, vmem_limit):
    N, C, H, W = x.shape
    kern = functools.partial(_fused_spatial_gate_kernel,
                             H=H, W=W, K=K, inv_c=1.0 / C)
    return pl.pallas_call(
        kern,
        out_shape=jax.ShapeDtypeStruct((N, C, H, W), x.dtype),
        grid_spec=pltpu.PrefetchScalarGridSpec(
            num_scalar_prefetch=0,
            grid=(N,),
            in_specs=[
                pl.BlockSpec(memory_space=pltpu.MemorySpace.SMEM),
                pl.BlockSpec((None, C, H, W), lambda n: (n, 0, 0, 0)),
            ],
            out_specs=pl.BlockSpec((None, C, H, W), lambda n: (n, 0, 0, 0)),
            scratch_shapes=[pltpu.VMEM((H + K - 1, W + K - 1), jnp.float32)],
        ),
        compiler_params=pltpu.CompilerParams(
            dimension_semantics=("parallel",),
            vmem_limit_bytes=int(vmem_limit)),
    )(params, x)


# ---------------------------------------------------------------------------
# Tiled 3-kernel fallback (only for C*H*W per batch element too big for VMEM).
# ---------------------------------------------------------------------------
def _channel_mean_kernel(x_ref, o_ref, *, inv_c):
    # x_ref: (1, C, THW) tile of x; o_ref: (1, 1, THW) channel-mean tile.
    x = x_ref[...].astype(jnp.float32)
    o_ref[...] = (jnp.sum(x, axis=1, keepdims=True) * inv_c).astype(o_ref.dtype)


def _att_conv_kernel(params_ref, a_ref, o_ref, *, H, W, K):
    # a_ref: (1, H+K-1, W+K-1) zero-padded channel-mean map (one batch element)
    # o_ref: (1, H, W) = sigmoid(BN(conv(mean)))
    acc = jnp.zeros((1, H, W), jnp.float32)
    for ky in range(K):
        for kx in range(K):
            tap = params_ref[ky * K + kx]
            acc = acc + tap * a_ref[:, ky:ky + H, kx:kx + W].astype(jnp.float32)
    acc = acc + params_ref[K * K]
    o_ref[...] = jax.nn.sigmoid(acc).astype(o_ref.dtype)


def _scale_kernel(x_ref, att_ref, o_ref):
    # x_ref: (1, C, THW); att_ref: (1, 1, THW); o_ref: (1, C, THW)
    x = x_ref[...].astype(jnp.float32)
    att = att_ref[...].astype(jnp.float32)   # broadcasts over C (sublane axis)
    o_ref[...] = (x * att).astype(o_ref.dtype)


def _spatial_gate_tiled(x, params, *, K, vmem_limit):
    N, C, H, W = x.shape
    HW = H * W
    pad = (K - 1) // 2
    itemsize = x.dtype.itemsize
    cparams2d = pltpu.CompilerParams(
        dimension_semantics=("parallel", "parallel"),
        vmem_limit_bytes=int(vmem_limit))

    # Lane-dense spatial tiling, sized to the per-generation VMEM budget.
    # No host-side padding of x / slicing of y: pl.cdiv grid + Pallas edge-block
    # clipping handle a ragged tail (garbage tail columns are never written).
    # TODO(synk): for very large C a C-reduction grid axis with a VMEM
    # accumulator would keep blocks inside the budget.
    block_budget = max(128 * C * itemsize, vmem_limit // 12)
    thw = (block_budget // max(1, C * itemsize)) // 128 * 128
    thw = max(128, thw)
    if thw >= HW:
        thw, n_sp = HW, 1          # block dim == full array dim is allowed
    else:
        n_sp = pl.cdiv(HW, thw)

    x_flat = x.reshape(N, C, HW)   # free: contiguous collapse

    # (1) MeanConv: channel mean.
    att_mean = pl.pallas_call(
        functools.partial(_channel_mean_kernel, inv_c=1.0 / C),
        out_shape=jax.ShapeDtypeStruct((N, 1, HW), jnp.float32),
        grid_spec=pltpu.PrefetchScalarGridSpec(
            num_scalar_prefetch=0,
            grid=(N, n_sp),
            in_specs=[pl.BlockSpec((1, C, thw), lambda n, s: (n, 0, s))],
            out_specs=pl.BlockSpec((1, 1, thw), lambda n, s: (n, 0, s)),
        ),
        compiler_params=cparams2d,
    )(x_flat)

    # (2) 7x7 conv + BN (folded) + sigmoid on the tiny (N, H, W) map.
    a_pad = jnp.pad(att_mean.reshape(N, H, W), ((0, 0), (pad, pad), (pad, pad)))
    att = pl.pallas_call(
        functools.partial(_att_conv_kernel, H=H, W=W, K=K),
        out_shape=jax.ShapeDtypeStruct((N, H, W), jnp.float32),
        grid_spec=pltpu.PrefetchScalarGridSpec(
            num_scalar_prefetch=0,
            grid=(N,),
            in_specs=[
                pl.BlockSpec(memory_space=pltpu.MemorySpace.SMEM),
                pl.BlockSpec((1, H + 2 * pad, W + 2 * pad), lambda n: (n, 0, 0)),
            ],
            out_specs=pl.BlockSpec((1, H, W), lambda n: (n, 0, 0)),
        ),
        compiler_params=pltpu.CompilerParams(
            dimension_semantics=("parallel",),
            vmem_limit_bytes=int(vmem_limit)),
    )(params, a_pad)

    # (3) gate x (broadcast over channels).
    att_flat = att.reshape(N, 1, HW)
    y = pl.pallas_call(
        _scale_kernel,
        out_shape=jax.ShapeDtypeStruct((N, C, HW), x.dtype),
        grid_spec=pltpu.PrefetchScalarGridSpec(
            num_scalar_prefetch=0,
            grid=(N, n_sp),
            in_specs=[
                pl.BlockSpec((1, C, thw), lambda n, s: (n, 0, s)),
                pl.BlockSpec((1, 1, thw), lambda n, s: (n, 0, s)),
            ],
            out_specs=pl.BlockSpec((1, C, thw), lambda n, s: (n, 0, s)),
        ),
        compiler_params=cparams2d,
    )(x_flat, att_flat)
    return y.reshape(N, C, H, W)


# ---------------------------------------------------------------------------
# Full SpatialGate forward.
# ---------------------------------------------------------------------------
def spatial_gate(x, conv_w, bn_gamma, bn_beta, bn_mean, bn_var, bn_eps=1e-5):
    """x: (N, C, H, W). conv_w: (1, 1, 7, 7). BN params: shape-(1,) arrays."""
    # TODO(synk): BatchNorm uses running statistics (inference mode); training-mode
    # batch statistics are not implemented.
    N, C, H, W = x.shape
    K = 7

    # Fold BN into the 7x7 conv taps: BN(conv(m)) = sum (w*scale)*m_shift + bias.
    bn_scale = (bn_gamma / jnp.sqrt(bn_var + bn_eps)).astype(jnp.float32)
    bn_bias = (bn_beta - bn_mean * bn_scale).astype(jnp.float32)
    params = jnp.concatenate(
        [conv_w.reshape(-1).astype(jnp.float32) * bn_scale, bn_bias.reshape(1)])

    vmem_cap = _vmem_capacity_bytes()
    vmem_limit = (vmem_cap * 3) // 4          # explicit scoped-VMEM limit

    # Fused path if the double-buffered per-batch-element working set fits:
    # 2x x block + 2x y block (native dtype) + one f32 working copy + halo.
    itemsize = x.dtype.itemsize
    per_elem = C * H * W
    fused_ws = (4 * per_elem * itemsize + 4 * per_elem
                + (H + K - 1) * (W + K - 1) * 4)
    if fused_ws <= vmem_limit // 2:
        return _spatial_gate_fused(x, params, K=K, vmem_limit=vmem_limit)
    return _spatial_gate_tiled(x, params, K=K, vmem_limit=vmem_limit)


if __name__ == "__main__":
    key = jax.random.PRNGKey(0)
    k_x, k_w = jax.random.split(key)
    N, C, H, W = 2, 4, 16, 16
    x = jax.random.normal(k_x, (N, C, H, W), dtype=jnp.float32)

    # Module parameters (deterministic).
    #   MeanConv weight = ones(1,C,1,1)/C  -> baked in as the 1/C constant.
    #   ConvBlock: Conv2d(1,1,7,pad=3,bias=False) + BatchNorm2d(1, eps=1e-5).
    conv_w = jax.random.normal(k_w, (1, 1, 7, 7), dtype=jnp.float32) * 0.05
    bn_gamma = jnp.ones((1,), jnp.float32)
    bn_beta = jnp.zeros((1,), jnp.float32)
    bn_mean = jnp.zeros((1,), jnp.float32)
    bn_var = jnp.ones((1,), jnp.float32)
    bn_eps = 1e-5

    out = spatial_gate(x, conv_w, bn_gamma, bn_beta, bn_mean, bn_var, bn_eps)
    out = jax.block_until_ready(out)

    # Pure-JAX reference with identical forward semantics.
    att1 = jnp.mean(x, axis=1, keepdims=True)
    att_ref = lax.conv_general_dilated(
        att1, conv_w, window_strides=(1, 1), padding=((3, 3), (3, 3)),
        dimension_numbers=("NCHW", "OIHW", "NCHW"))
    att_ref = (att_ref - bn_mean) / jnp.sqrt(bn_var + bn_eps) * bn_gamma + bn_beta
    ref = x * jax.nn.sigmoid(att_ref)

    assert out.shape == x.shape
    assert jnp.allclose(out, ref, atol=1e-5, rtol=1e-5)
    print("KERNEL_OK")
</pallas_src>

<mosaic_0001>
module attributes {stable_mosaic.version = 11 : i64} {
  func.func @_fused_spatial_gate_kernel(%arg0: i32, %arg1: memref<50xf32, #tpu.memory_space<smem>>, %arg2: memref<1x4x16x16xf32, #tpu.memory_space<vmem>>, %arg3: memref<1x4x16x16xf32, #tpu.memory_space<vmem>>, %arg4: memref<22x22xf32, #tpu.memory_space<vmem>>) attributes {dimension_semantics = [#tpu.dimension_semantics<parallel>], iteration_bounds = array<i64: 2>, scalar_prefetch = 0 : i64, scratch_operands = 1 : i64, tpu.core_type = #tpu.core_type<tc>, window_params = [{transform_indices = @transform_0, window_bounds = array<i64: 50>}, {transform_indices = @transform_1, window_bounds = array<i64: 1, 4, 16, 16>}, {transform_indices = @transform_2, window_bounds = array<i64: 1, 4, 16, 16>}]} {
    %c0 = arith.constant 0 : index
    %c0_0 = arith.constant 0 : index
    %c0_1 = arith.constant 0 : index
    %c0_2 = arith.constant 0 : index
    %0 = vector.load %arg2[%c0, %c0_0, %c0_1, %c0_2] : memref<1x4x16x16xf32, #tpu.memory_space<vmem>>, vector<1x4x16x16xf32>
    %1 = vector.shape_cast %0 : vector<1x4x16x16xf32> to vector<4x16x16xf32>
    %cst = arith.constant dense<0.000000e+00> : vector<16x16xf32>
    %2 = vector.multi_reduction <add>, %1, %cst [0] : vector<4x16x16xf32> to vector<16x16xf32>
    %cst_3 = arith.constant 2.500000e-01 : f32
    %3 = vector.broadcast %cst_3 : f32 to vector<16x16xf32>
    %4 = arith.mulf %2, %3 : vector<16x16xf32>
    %cst_4 = arith.constant 0.000000e+00 : f32
    %5 = vector.broadcast %cst_4 : f32 to vector<22x22xf32>
    %c0_5 = arith.constant 0 : index
    %c0_6 = arith.constant 0 : index
    %6 = vector.load %arg4[%c0_5, %c0_6] : memref<22x22xf32, #tpu.memory_space<vmem>>, vector<22x22xf32>
    tpu.vector_store %arg4[%c0_5, %c0_6], %5 {strides = array<i32>} : memref<22x22xf32, #tpu.memory_space<vmem>>, vector<22x22xf32>,
    %c3 = arith.constant 3 : index
    %c3_7 = arith.constant 3 : index
    %7 = vector.load %arg4[%c3, %c3_7] : memref<22x22xf32, #tpu.memory_space<vmem>>, vector<16x16xf32>
    tpu.vector_store %arg4[%c3, %c3_7], %4 {strides = array<i32>} : memref<22x22xf32, #tpu.memory_space<vmem>>, vector<16x16xf32>,
    %cst_8 = arith.constant 0.000000e+00 : f32
    %8 = vector.broadcast %cst_8 : f32 to vector<16x16xf32>
    %c0_9 = arith.constant 0 : index
    %9 = memref.load %arg1[%c0_9] : memref<50xf32, #tpu.memory_space<smem>>
    %c0_10 = arith.constant 0 : index
    %c0_11 = arith.constant 0 : index
    %10 = vector.load %arg4[%c0_10, %c0_11] : memref<22x22xf32, #tpu.memory_space<vmem>>, vector<16x16xf32>
    %11 = vector.broadcast %9 : f32 to vector<16x16xf32>
    %12 = arith.mulf %11, %10 : vector<16x16xf32>
    %13 = arith.addf %8, %12 : vector<16x16xf32>
    %c1 = arith.constant 1 : index
    %14 = memref.load %arg1[%c1] : memref<50xf32, #tpu.memory_space<smem>>
    %c0_12 = arith.constant 0 : index
    %c1_13 = arith.constant 1 : index
    %15 = vector.load %arg4[%c0_12, %c1_13] : memref<22x22xf32, #tpu.memory_space<vmem>>, vector<16x16xf32>
    %16 = vector.broadcast %14 : f32 to vector<16x16xf32>
    %17 = arith.mulf %16, %15 : vector<16x16xf32>
    %18 = arith.addf %13, %17 : vector<16x16xf32>
    %c2 = arith.constant 2 : index
    %19 = memref.load %arg1[%c2] : memref<50xf32, #tpu.memory_space<smem>>
    %c0_14 = arith.constant 0 : index
    %c2_15 = arith.constant 2 : index
    %20 = vector.load %arg4[%c0_14, %c2_15] : memref<22x22xf32, #tpu.memory_space<vmem>>, vector<16x16xf32>
    %21 = vector.broadcast %19 : f32 to vector<16x16xf32>
    %22 = arith.mulf %21, %20 : vector<16x16xf32>
    %23 = arith.addf %18, %22 : vector<16x16xf32>
    %c3_16 = arith.constant 3 : index
    %24 = memref.load %arg1[%c3_16] : memref<50xf32, #tpu.memory_space<smem>>
    %c0_17 = arith.constant 0 : index
    %c3_18 = arith.constant 3 : index
    %25 = vector.load %arg4[%c0_17, %c3_18] : memref<22x22xf32, #tpu.memory_space<vmem>>, vector<16x16xf32>
    %26 = vector.broadcast %24 : f32 to vector<16x16xf32>
    %27 = arith.mulf %26, %25 : vector<16x16xf32>
    %28 = arith.addf %23, %27 : vector<16x16xf32>
    %c4 = arith.constant 4 : index
    %29 = memref.load %arg1[%c4] : memref<50xf32, #tpu.memory_space<smem>>
    %c0_19 = arith.constant 0 : index
    %c4_20 = arith.constant 4 : index
    %30 = vector.load %arg4[%c0_19, %c4_20] : memref<22x22xf32, #tpu.memory_space<vmem>>, vector<16x16xf32>
    %31 = vector.broadcast %29 : f32 to vector<16x16xf32>
    %32 = arith.mulf %31, %30 : vector<16x16xf32>
    %33 = arith.addf %28, %32 : vector<16x16xf32>
    %c5 = arith.constant 5 : index
    %34 = memref.load %arg1[%c5] : memref<50xf32, #tpu.memory_space<smem>>
    %c0_21 = arith.constant 0 : index
    %c5_22 = arith.constant 5 : index
    %35 = vector.load %arg4[%c0_21, %c5_22] : memref<22x22xf32, #tpu.memory_space<vmem>>, vector<16x16xf32>
    %36 = vector.broadcast %34 : f32 to vector<16x16xf32>
    %37 = arith.mulf %36, %35 : vector<16x16xf32>
    %38 = arith.addf %33, %37 : vector<16x16xf32>
    %c6 = arith.constant 6 : index
    %39 = memref.load %arg1[%c6] : memref<50xf32, #tpu.memory_space<smem>>
    %c0_23 = arith.constant 0 : index
    %c6_24 = arith.constant 6 : index
    %40 = vector.load %arg4[%c0_23, %c6_24] : memref<22x22xf32, #tpu.memory_space<vmem>>, vector<16x16xf32>
    %41 = vector.broadcast %39 : f32 to vector<16x16xf32>
    %42 = arith.mulf %41, %40 : vector<16x16xf32>
    %43 = arith.addf %38, %42 : vector<16x16xf32>
    %c7 = arith.constant 7 : index
    %44 = memref.load %arg1[%c7] : memref<50xf32, #tpu.memory_space<smem>>
    %c1_25 = arith.constant 1 : index
    %c0_26 = arith.constant 0 : index
    %45 = vector.load %arg4[%c1_25, %c0_26] : memref<22x22xf32, #tpu.memory_space<vmem>>, vector<16x16xf32>
    %46 = vector.broadcast %44 : f32 to vector<16x16xf32>
    %47 = arith.mulf %46, %45 : vector<16x16xf32>
    %48 = arith.addf %43, %47 : vector<16x16xf32>
    %c8 = arith.constant 8 : index
    %49 = memref.load %arg1[%c8] : memref<50xf32, #tpu.memory_space<smem>>
    %c1_27 = arith.constant 1 : index
    %c1_28 = arith.constant 1 : index
    %50 = vector.load %arg4[%c1_27, %c1_28] : memref<22x22xf32, #tpu.memory_space<vmem>>, vector<16x16xf32>
    %51 = vector.broadcast %49 : f32 to vector<16x16xf32>
    %52 = arith.mulf %51, %50 : vector<16x16xf32>
    %53 = arith.addf %48, %52 : vector<16x16xf32>
    %c9 = arith.constant 9 : index
    %54 = memref.load %arg1[%c9] : memref<50xf32, #tpu.memory_space<smem>>
    %c1_29 = arith.constant 1 : index
    %c2_30 = arith.constant 2 : index
    %55 = vector.load %arg4[%c1_29, %c2_30] : memref<22x22xf32, #tpu.memory_space<vmem>>, vector<16x16xf32>
    %56 = vector.broadcast %54 : f32 to vector<16x16xf32>
    %57 = arith.mulf %56, %55 : vector<16x16xf32>
    %58 = arith.addf %53, %57 : vector<16x16xf32>
    %c10 = arith.constant 10 : index
    %59 = memref.load %arg1[%c10] : memref<50xf32, #tpu.memory_space<smem>>
    %c1_31 = arith.constant 1 : index
    %c3_32 = arith.constant 3 : index
    %60 = vector.load %arg4[%c1_31, %c3_32] : memref<22x22xf32, #tpu.memory_space<vmem>>, vector<16x16xf32>
    %61 = vector.broadcast %59 : f32 to vector<16x16xf32>
    %62 = arith.mulf %61, %60 : vector<16x16xf32>
    %63 = arith.addf %58, %62 : vector<16x16xf32>
    %c11 = arith.constant 11 : index
    %64 = memref.load %arg1[%c11] : memref<50xf32, #tpu.memory_space<smem>>
    %c1_33 = arith.constant 1 : index
    %c4_34 = arith.constant 4 : index
    %65 = vector.load %arg4[%c1_33, %c4_34] : memref<22x22xf32, #tpu.memory_space<vmem>>, vector<16x16xf32>
    %66 = vector.broadcast %64 : f32 to vector<16x16xf32>
    %67 = arith.mulf %66, %65 : vector<16x16xf32>
    %68 = arith.addf %63, %67 : vector<16x16xf32>
    %c12 = arith.constant 12 : index
    %69 = memref.load %arg1[%c12] : memref<50xf32, #tpu.memory_space<smem>>
    %c1_35 = arith.constant 1 : index
    %c5_36 = arith.constant 5 : index
    %70 = vector.load %arg4[%c1_35, %c5_36] : memref<22x22xf32, #tpu.memory_space<vmem>>, vector<16x16xf32>
    %71 = vector.broadcast %69 : f32 to vector<16x16xf32>
    %72 = arith.mulf %71, %70 : vector<16x16xf32>
    %73 = arith.addf %68, %72 : vector<16x16xf32>
    %c13 = arith.constant 13 : index
    %74 = memref.load %arg1[%c13] : memref<50xf32, #tpu.memory_space<smem>>
    %c1_37 = arith.constant 1 : index
    %c6_38 = arith.constant 6 : index
    %75 = vector.load %arg4[%c1_37, %c6_38] : memref<22x22xf32, #tpu.memory_space<vmem>>, vector<16x16xf32>
    %76 = vector.broadcast %74 : f32 to vector<16x16xf32>
    %77 = arith.mulf %76, %75 : vector<16x16xf32>
    %78 = arith.addf %73, %77 : vector<16x16xf32>
    %c14 = arith.constant 14 : index
    %79 = memref.load %arg1[%c14] : memref<50xf32, #tpu.memory_space<smem>>
    %c2_39 = arith.constant 2 : index
    %c0_40 = arith.constant 0 : index
    %80 = vector.load %arg4[%c2_39, %c0_40] : memref<22x22xf32, #tpu.memory_space<vmem>>, vector<16x16xf32>
    %81 = vector.broadcast %79 : f32 to vector<16x16xf32>
    %82 = arith.mulf %81, %80 : vector<16x16xf32>
    %83 = arith.addf %78, %82 : vector<16x16xf32>
    %c15 = arith.constant 15 : index
    %84 = memref.load %arg1[%c15] : memref<50xf32, #tpu.memory_space<smem>>
    %c2_41 = arith.constant 2 : index
    %c1_42 = arith.constant 1 : index
    %85 = vector.load %arg4[%c2_41, %c1_42] : memref<22x22xf32, #tpu.memory_space<vmem>>, vector<16x16xf32>
    %86 = vector.broadcast %84 : f32 to vector<16x16xf32>
    %87 = arith.mulf %86, %85 : vector<16x16xf32>
    %88 = arith.addf %83, %87 : vector<16x16xf32>
    %c16 = arith.constant 16 : index
    %89 = memref.load %arg1[%c16] : memref<50xf32, #tpu.memory_space<smem>>
    %c2_43 = arith.constant 2 : index
    %c2_44 = arith.constant 2 : index
    %90 = vector.load %arg4[%c2_43, %c2_44] : memref<22x22xf32, #tpu.memory_space<vmem>>, vector<16x16xf32>
    %91 = vector.broadcast %89 : f32 to vector<16x16xf32>
    %92 = arith.mulf %91, %90 : vector<16x16xf32>
    %93 = arith.addf %88, %92 : vector<16x16xf32>
    %c17 = arith.constant 17 : index
    %94 = memref.load %arg1[%c17] : memref<50xf32, #tpu.memory_space<smem>>
    %c2_45 = arith.constant 2 : index
    %c3_46 = arith.constant 3 : index
    %95 = vector.load %arg4[%c2_45, %c3_46] : memref<22x22xf32, #tpu.memory_space<vmem>>, vector<16x16xf32>
    %96 = vector.broadcast %94 : f32 to vector<16x16xf32>
    %97 = arith.mulf %96, %95 : vector<16x16xf32>
    %98 = arith.addf %93, %97 : vector<16x16xf32>
    %c18 = arith.constant 18 : index
    %99 = memref.load %arg1[%c18] : memref<50xf32, #tpu.memory_space<smem>>
    %c2_47 = arith.constant 2 : index
    %c4_48 = arith.constant 4 : index
    %100 = vector.load %arg4[%c2_47, %c4_48] : memref<22x22xf32, #tpu.memory_space<vmem>>, vector<16x16xf32>
    %101 = vector.broadcast %99 : f32 to vector<16x16xf32>
    %102 = arith.mulf %101, %100 : vector<16x16xf32>
    %103 = arith.addf %98, %102 : vector<16x16xf32>
    %c19 = arith.constant 19 : index
    %104 = memref.load %arg1[%c19] : memref<50xf32, #tpu.memory_space<smem>>
    %c2_49 = arith.constant 2 : index
    %c5_50 = arith.constant 5 : index
    %105 = vector.load %arg4[%c2_49, %c5_50] : memref<22x22xf32, #tpu.memory_space<vmem>>, vector<16x16xf32>
    %106 = vector.broadcast %104 : f32 to vector<16x16xf32>
    %107 = arith.mulf %106, %105 : vector<16x16xf32>
    %108 = arith.addf %103, %107 : vector<16x16xf32>
    %c20 = arith.constant 20 : index
    %109 = memref.load %arg1[%c20] : memref<50xf32, #tpu.memory_space<smem>>
    %c2_51 = arith.constant 2 : index
    %c6_52 = arith.constant 6 : index
    %110 = vector.load %arg4[%c2_51, %c6_52] : memref<22x22xf32, #tpu.memory_space<vmem>>, vector<16x16xf32>
    %111 = vector.broadcast %109 : f32 to vector<16x16xf32>
    %112 = arith.mulf %111, %110 : vector<16x16xf32>
    %113 = arith.addf %108, %112 : vector<16x16xf32>
    %c21 = arith.constant 21 : index
    %114 = memref.load %arg1[%c21] : memref<50xf32, #tpu.memory_space<smem>>
    %c3_53 = arith.constant 3 : index
    %c0_54 = arith.constant 0 : index
    %115 = vector.load %arg4[%c3_53, %c0_54] : memref<22x22xf32, #tpu.memory_space<vmem>>, vector<16x16xf32>
    %116 = vector.broadcast %114 : f32 to vector<16x16xf32>
    %117 = arith.mulf %116, %115 : vector<16x16xf32>
    %118 = arith.addf %113, %117 : vector<16x16xf32>
    %c22 = arith.constant 22 : index
    %119 = memref.load %arg1[%c22] : memref<50xf32, #tpu.memory_space<smem>>
    %c3_55 = arith.constant 3 : index
    %c1_56 = arith.constant 1 : index
    %120 = vector.load %arg4[%c3_55, %c1_56] : memref<22x22xf32, #tpu.memory_space<vmem>>, vector<16x16xf32>
    %121 = vector.broadcast %119 : f32 to vector<16x16xf32>
    %122 = arith.mulf %121, %120 : vector<16x16xf32>
    %123 = arith.addf %118, %122 : vector<16x16xf32>
    %c23 = arith.constant 23 : index
    %124 = memref.load %arg1[%c23] : memref<50xf32, #tpu.memory_space<smem>>
    %c3_57 = arith.constant 3 : index
    %c2_58 = arith.constant 2 : index
    %125 = vector.load %arg4[%c3_57, %c2_58] : memref<22x22xf32, #tpu.memory_space<vmem>>, vector<16x16xf32>
    %126 = vector.broadcast %124 : f32 to vector<16x16xf32>
    %127 = arith.mulf %126, %125 : vector<16x16xf32>
    %128 = arith.addf %123, %127 : vector<16x16xf32>
    %c24 = arith.constant 24 : index
    %129 = memref.load %arg1[%c24] : memref<50xf32, #tpu.memory_space<smem>>
    %c3_59 = arith.constant 3 : index
    %c3_60 = arith.constant 3 : index
    %130 = vector.load %arg4[%c3_59, %c3_60] : memref<22x22xf32, #tpu.memory_space<vmem>>, vector<16x16xf32>
    %131 = vector.broadcast %129 : f32 to vector<16x16xf32>
    %132 = arith.mulf %131, %130 : vector<16x16xf32>
    %133 = arith.addf %128, %132 : vector<16x16xf32>
    %c25 = arith.constant 25 : index
    %134 = memref.load %arg1[%c25] : memref<50xf32, #tpu.memory_space<smem>>
    %c3_61 = arith.constant 3 : index
    %c4_62 = arith.constant 4 : index
    %135 = vector.load %arg4[%c3_61, %c4_62] : memref<22x22xf32, #tpu.memory_space<vmem>>, vector<16x16xf32>
    %136 = vector.broadcast %134 : f32 to vector<16x16xf32>
    %137 = arith.mulf %136, %135 : vector<16x16xf32>
    %138 = arith.addf %133, %137 : vector<16x16xf32>
    %c26 = arith.constant 26 : index
    %139 = memref.load %arg1[%c26] : memref<50xf32, #tpu.memory_space<smem>>
    %c3_63 = arith.constant 3 : index
    %c5_64 = arith.constant 5 : index
    %140 = vector.load %arg4[%c3_63, %c5_64] : memref<22x22xf32, #tpu.memory_space<vmem>>, vector<16x16xf32>
    %141 = vector.broadcast %139 : f32 to vector<16x16xf32>
    %142 = arith.mulf %141, %140 : vector<16x16xf32>
    %143 = arith.addf %138, %142 : vector<16x16xf32>
    %c27 = arith.constant 27 : index
    %144 = memref.load %arg1[%c27] : memref<50xf32, #tpu.memory_space<smem>>
    %c3_65 = arith.constant 3 : index
    %c6_66 = arith.constant 6 : index
    %145 = vector.load %arg4[%c3_65, %c6_66] : memref<22x22xf32, #tpu.memory_space<vmem>>, vector<16x16xf32>
    %146 = vector.broadcast %144 : f32 to vector<16x16xf32>
    %147 = arith.mulf %146, %145 : vector<16x16xf32>
    %148 = arith.addf %143, %147 : vector<16x16xf32>
    %c28 = arith.constant 28 : index
    %149 = memref.load %arg1[%c28] : memref<50xf32, #tpu.memory_space<smem>>
    %c4_67 = arith.constant 4 : index
    %c0_68 = arith.constant 0 : index
    %150 = vector.load %arg4[%c4_67, %c0_68] : memref<22x22xf32, #tpu.memory_space<vmem>>, vector<16x16xf32>
    %151 = vector.broadcast %149 : f32 to vector<16x16xf32>
    %152 = arith.mulf %151, %150 : vector<16x16xf32>
    %153 = arith.addf %148, %152 : vector<16x16xf32>
    %c29 = arith.constant 29 : index
    %154 = memref.load %arg1[%c29] : memref<50xf32, #tpu.memory_space<smem>>
    %c4_69 = arith.constant 4 : index
    %c1_70 = arith.constant 1 : index
    %155 = vector.load %arg4[%c4_69, %c1_70] : memref<22x22xf32, #tpu.memory_space<vmem>>, vector<16x16xf32>
    %156 = vector.broadcast %154 : f32 to vector<16x16xf32>
    %157 = arith.mulf %156, %155 : vector<16x16xf32>
    %158 = arith.addf %153, %157 : vector<16x16xf32>
    %c30 = arith.constant 30 : index
    %159 = memref.load %arg1[%c30] : memref<50xf32, #tpu.memory_space<smem>>
    %c4_71 = arith.constant 4 : index
    %c2_72 = arith.constant 2 : index
    %160 = vector.load %arg4[%c4_71, %c2_72] : memref<22x22xf32, #tpu.memory_space<vmem>>, vector<16x16xf32>
    %161 = vector.broadcast %159 : f32 to vector<16x16xf32>
    %162 = arith.mulf %161, %160 : vector<16x16xf32>
    %163 = arith.addf %158, %162 : vector<16x16xf32>
    %c31 = arith.constant 31 : index
    %164 = memref.load %arg1[%c31] : memref<50xf32, #tpu.memory_space<smem>>
    %c4_73 = arith.constant 4 : index
    %c3_74 = arith.constant 3 : index
    %165 = vector.load %arg4[%c4_73, %c3_74] : memref<22x22xf32, #tpu.memory_space<vmem>>, vector<16x16xf32>
    %166 = vector.broadcast %164 : f32 to vector<16x16xf32>
    %167 = arith.mulf %166, %165 : vector<16x16xf32>
    %168 = arith.addf %163, %167 : vector<16x16xf32>
    %c32 = arith.constant 32 : index
    %169 = memref.load %arg1[%c32] : memref<50xf32, #tpu.memory_space<smem>>
    %c4_75 = arith.constant 4 : index
    %c4_76 = arith.constant 4 : index
    %170 = vector.load %arg4[%c4_75, %c4_76] : memref<22x22xf32, #tpu.memory_space<vmem>>, vector<16x16xf32>
    %171 = vector.broadcast %169 : f32 to vector<16x16xf32>
    %172 = arith.mulf %171, %170 : vector<16x16xf32>
    %173 = arith.addf %168, %172 : vector<16x16xf32>
    %c33 = arith.constant 33 : index
    %174 = memref.load %arg1[%c33] : memref<50xf32, #tpu.memory_space<smem>>
    %c4_77 = arith.constant 4 : index
    %c5_78 = arith.constant 5 : index
    %175 = vector.load %arg4[%c4_77, %c5_78] : memref<22x22xf32, #tpu.memory_space<vmem>>, vector<16x16xf32>
    %176 = vector.broadcast %174 : f32 to vector<16x16xf32>
    %177 = arith.mulf %176, %175 : vector<16x16xf32>
    %178 = arith.addf %173, %177 : vector<16x16xf32>
    %c34 = arith.constant 34 : index
    %179 = memref.load %arg1[%c34] : memref<50xf32, #tpu.memory_space<smem>>
    %c4_79 = arith.constant 4 : index
    %c6_80 = arith.constant 6 : index
    %180 = vector.load %arg4[%c4_79, %c6_80] : memref<22x22xf32, #tpu.memory_space<vmem>>, vector<16x16xf32>
    %181 = vector.broadcast %179 : f32 to vector<16x16xf32>
    %182 = arith.mulf %181, %180 : vector<16x16xf32>
    %183 = arith.addf %178, %182 : vector<16x16xf32>
    %c35 = arith.constant 35 : index
    %184 = memref.load %arg1[%c35] : memref<50xf32, #tpu.memory_space<smem>>
    %c5_81 = arith.constant 5 : index
    %c0_82 = arith.constant 0 : index
    %185 = vector.load %arg4[%c5_81, %c0_82] : memref<22x22xf32, #tpu.memory_space<vmem>>, vector<16x16xf32>
    %186 = vector.broadcast %184 : f32 to vector<16x16xf32>
    %187 = arith.mulf %186, %185 : vector<16x16xf32>
    %188 = arith.addf %183, %187 : vector<16x16xf32>
    %c36 = arith.constant 36 : index
    %189 = memref.load %arg1[%c36] : memref<50xf32, #tpu.memory_space<smem>>
    %c5_83 = arith.constant 5 : index
    %c1_84 = arith.constant 1 : index
    %190 = vector.load %arg4[%c5_83, %c1_84] : memref<22x22xf32, #tpu.memory_space<vmem>>, vector<16x16xf32>
    %191 = vector.broadcast %189 : f32 to vector<16x16xf32>
    %192 = arith.mulf %191, %190 : vector<16x16xf32>
    %193 = arith.addf %188, %192 : vector<16x16xf32>
    %c37 = arith.constant 37 : index
    %194 = memref.load %arg1[%c37] : memref<50xf32, #tpu.memory_space<smem>>
    %c5_85 = arith.constant 5 : index
    %c2_86 = arith.constant 2 : index
    %195 = vector.load %arg4[%c5_85, %c2_86] : memref<22x22xf32, #tpu.memory_space<vmem>>, vector<16x16xf32>
    %196 = vector.broadcast %194 : f32 to vector<16x16xf32>
    %197 = arith.mulf %196, %195 : vector<16x16xf32>
    %198 = arith.addf %193, %197 : vector<16x16xf32>
    %c38 = arith.constant 38 : index
    %199 = memref.load %arg1[%c38] : memref<50xf32, #tpu.memory_space<smem>>
    %c5_87 = arith.constant 5 : index
    %c3_88 = arith.constant 3 : index
    %200 = vector.load %arg4[%c5_87, %c3_88] : memref<22x22xf32, #tpu.memory_space<vmem>>, vector<16x16xf32>
    %201 = vector.broadcast %199 : f32 to vector<16x16xf32>
    %202 = arith.mulf %201, %200 : vector<16x16xf32>
    %203 = arith.addf %198, %202 : vector<16x16xf32>
    %c39 = arith.constant 39 : index
    %204 = memref.load %arg1[%c39] : memref<50xf32, #tpu.memory_space<smem>>
    %c5_89 = arith.constant 5 : index
    %c4_90 = arith.constant 4 : index
    %205 = vector.load %arg4[%c5_89, %c4_90] : memref<22x22xf32, #tpu.memory_space<vmem>>, vector<16x16xf32>
    %206 = vector.broadcast %204 : f32 to vector<16x16xf32>
    %207 = arith.mulf %206, %205 : vector<16x16xf32>
    %208 = arith.addf %203, %207 : vector<16x16xf32>
    %c40 = arith.constant 40 : index
    %209 = memref.load %arg1[%c40] : memref<50xf32, #tpu.memory_space<smem>>
    %c5_91 = arith.constant 5 : index
    %c5_92 = arith.constant 5 : index
    %210 = vector.load %arg4[%c5_91, %c5_92] : memref<22x22xf32, #tpu.memory_space<vmem>>, vector<16x16xf32>
    %211 = vector.broadcast %209 : f32 to vector<16x16xf32>
    %212 = arith.mulf %211, %210 : vector<16x16xf32>
    %213 = arith.addf %208, %212 : vector<16x16xf32>
    %c41 = arith.constant 41 : index
    %214 = memref.load %arg1[%c41] : memref<50xf32, #tpu.memory_space<smem>>
    %c5_93 = arith.constant 5 : index
    %c6_94 = arith.constant 6 : index
    %215 = vector.load %arg4[%c5_93, %c6_94] : memref<22x22xf32, #tpu.memory_space<vmem>>, vector<16x16xf32>
    %216 = vector.broadcast %214 : f32 to vector<16x16xf32>
    %217 = arith.mulf %216, %215 : vector<16x16xf32>
    %218 = arith.addf %213, %217 : vector<16x16xf32>
    %c42 = arith.constant 42 : index
    %219 = memref.load %arg1[%c42] : memref<50xf32, #tpu.memory_space<smem>>
    %c6_95 = arith.constant 6 : index
    %c0_96 = arith.constant 0 : index
    %220 = vector.load %arg4[%c6_95, %c0_96] : memref<22x22xf32, #tpu.memory_space<vmem>>, vector<16x16xf32>
    %221 = vector.broadcast %219 : f32 to vector<16x16xf32>
    %222 = arith.mulf %221, %220 : vector<16x16xf32>
    %223 = arith.addf %218, %222 : vector<16x16xf32>
    %c43 = arith.constant 43 : index
    %224 = memref.load %arg1[%c43] : memref<50xf32, #tpu.memory_space<smem>>
    %c6_97 = arith.constant 6 : index
    %c1_98 = arith.constant 1 : index
    %225 = vector.load %arg4[%c6_97, %c1_98] : memref<22x22xf32, #tpu.memory_space<vmem>>, vector<16x16xf32>
    %226 = vector.broadcast %224 : f32 to vector<16x16xf32>
    %227 = arith.mulf %226, %225 : vector<16x16xf32>
    %228 = arith.addf %223, %227 : vector<16x16xf32>
    %c44 = arith.constant 44 : index
    %229 = memref.load %arg1[%c44] : memref<50xf32, #tpu.memory_space<smem>>
    %c6_99 = arith.constant 6 : index
    %c2_100 = arith.constant 2 : index
    %230 = vector.load %arg4[%c6_99, %c2_100] : memref<22x22xf32, #tpu.memory_space<vmem>>, vector<16x16xf32>
    %231 = vector.broadcast %229 : f32 to vector<16x16xf32>
    %232 = arith.mulf %231, %230 : vector<16x16xf32>
    %233 = arith.addf %228, %232 : vector<16x16xf32>
    %c45 = arith.constant 45 : index
    %234 = memref.load %arg1[%c45] : memref<50xf32, #tpu.memory_space<smem>>
    %c6_101 = arith.constant 6 : index
    %c3_102 = arith.constant 3 : index
    %235 = vector.load %arg4[%c6_101, %c3_102] : memref<22x22xf32, #tpu.memory_space<vmem>>, vector<16x16xf32>
    %236 = vector.broadcast %234 : f32 to vector<16x16xf32>
    %237 = arith.mulf %236, %235 : vector<16x16xf32>
    %238 = arith.addf %233, %237 : vector<16x16xf32>
    %c46 = arith.constant 46 : index
    %239 = memref.load %arg1[%c46] : memref<50xf32, #tpu.memory_space<smem>>
    %c6_103 = arith.constant 6 : index
    %c4_104 = arith.constant 4 : index
    %240 = vector.load %arg4[%c6_103, %c4_104] : memref<22x22xf32, #tpu.memory_space<vmem>>, vector<16x16xf32>
    %241 = vector.broadcast %239 : f32 to vector<16x16xf32>
    %242 = arith.mulf %241, %240 : vector<16x16xf32>
    %243 = arith.addf %238, %242 : vector<16x16xf32>
    %c47 = arith.constant 47 : index
    %244 = memref.load %arg1[%c47] : memref<50xf32, #tpu.memory_space<smem>>
    %c6_105 = arith.constant 6 : index
    %c5_106 = arith.constant 5 : index
    %245 = vector.load %arg4[%c6_105, %c5_106] : memref<22x22xf32, #tpu.memory_space<vmem>>, vector<16x16xf32>
    %246 = vector.broadcast %244 : f32 to vector<16x16xf32>
    %247 = arith.mulf %246, %245 : vector<16x16xf32>
    %248 = arith.addf %243, %247 : vector<16x16xf32>
    %c48 = arith.constant 48 : index
    %249 = memref.load %arg1[%c48] : memref<50xf32, #tpu.memory_space<smem>>
    %c6_107 = arith.constant 6 : index
    %c6_108 = arith.constant 6 : index
    %250 = vector.load %arg4[%c6_107, %c6_108] : memref<22x22xf32, #tpu.memory_space<vmem>>, vector<16x16xf32>
    %251 = vector.broadcast %249 : f32 to vector<16x16xf32>
    %252 = arith.mulf %251, %250 : vector<16x16xf32>
    %253 = arith.addf %248, %252 : vector<16x16xf32>
    %c49 = arith.constant 49 : index
    %254 = memref.load %arg1[%c49] : memref<50xf32, #tpu.memory_space<smem>>
    %255 = vector.broadcast %254 : f32 to vector<16x16xf32>
    %256 = arith.addf %253, %255 : vector<16x16xf32>
    %257 = arith.negf %256 : vector<16x16xf32>
    %258 = math.exp %257 : vector<16x16xf32>
    %cst_109 = arith.constant 1.000000e+00 : f32
    %259 = vector.broadcast %cst_109 : f32 to vector<16x16xf32>
    %260 = arith.addf %259, %258 : vector<16x16xf32>
    %261 = arith.divf %259, %260 : vector<16x16xf32>
    %262 = vector.shape_cast %261 : vector<16x16xf32> to vector<1x16x16xf32>
    %263 = vector.broadcast %262 : vector<1x16x16xf32> to vector<4x16x16xf32>
    %264 = arith.mulf %1, %263 : vector<4x16x16xf32>
    %c0_110 = arith.constant 0 : index
    %c0_111 = arith.constant 0 : index
    %c0_112 = arith.constant 0 : index
    %c0_113 = arith.constant 0 : index
    %265 = vector.load %arg3[%c0_110, %c0_111, %c0_112, %c0_113] : memref<1x4x16x16xf32, #tpu.memory_space<vmem>>, vector<1x4x16x16xf32>
    %266 = vector.shape_cast %265 : vector<1x4x16x16xf32> to vector<4x16x16xf32>
    %267 = vector.shape_cast %264 : vector<4x16x16xf32> to vector<1x4x16x16xf32>
    tpu.vector_store %arg3[%c0_110, %c0_111, %c0_112, %c0_113], %267 {strides = array<i32>} : memref<1x4x16x16xf32, #tpu.memory_space<vmem>>, vector<1x4x16x16xf32>,
    return
  }
  func.func @transform_0(%arg0: i32) -> i32 {
    %c0_i32 = arith.constant 0 : i32
    %c0_i32_0 = arith.constant 0 : i32
    return %c0_i32 : i32
  }
  func.func @transform_1(%arg0: i32) -> (i32, i32, i32, i32) {
    %c0_i32 = arith.constant 0 : i32
    %c0_i32_0 = arith.constant 0 : i32
    %c0_i32_1 = arith.constant 0 : i32
    %c0_i32_2 = arith.constant 0 : i32
    return %arg0, %c0_i32, %c0_i32_0, %c0_i32_1 : i32, i32, i32, i32
  }
  func.func @transform_2(%arg0: i32) -> (i32, i32, i32, i32) {
    %c0_i32 = arith.constant 0 : i32
    %c0_i32_0 = arith.constant 0 : i32
    %c0_i32_1 = arith.constant 0 : i32
    %c0_i32_2 = arith.constant 0 : i32
    return %arg0, %c0_i32, %c0_i32_0, %c0_i32_1 : i32, i32, i32, i32
  }
}

</mosaic_0001>

<bundles_post_ra>
// kernel: tpu_custom_call.1
= control target key start
LH: loop header
LB: loop body
LE: loop exit
PB: predicated region body
PF: predicated region fallthrough
CT: control target
= control target key end

     0   :  { %7 = vsyncpa [#allocation6], 0  ;;  %s1795_s0 = inlined_call_operand.hbm [shape: f32[50], index: 0, kind: input, shape index: {}]   ;;  %s1796_s1 = inlined_call_operand.hbm [shape: f32[2,4,16,16], index: 1, kind: input, shape index: {}]   ;;  %s1797_s2 = inlined_call_operand.hbm [shape: f32[2,4,16,16], index: 2, kind: output, shape index: {}]  }
   0x1   :  { %8 = vsyncpa [#allocation4], 0 }
   0x2   :  { %10 = vsyncpa [#allocation4 + $0x1], 0 }
   0x3   :  { %11 = vsyncpa [#allocation5], 0 }
   0x4   :  { %13 = vsyncpa [#allocation5 + $0x1], 0  ;;  %s1289_s9 = smov 0   ;;  %s1291_s10 = smov 0  }
   0x5   :  { %s1293_s11 = smov 0   ;;  %s1295_s12 = smov 0  }
   0x6 LB: > { %s1310_s13 = sadd.s32 4294967295, %s1257_s12   ;;  %s990_s14 = sadd.s32 4294967294, %s1257_s12   ;;  %s1257_s12 = sphi %s1295_s12, %s1817_s12   ;;  %s1253_s11 = sphi %s1293_s11, %s1816_s11   ;;  %s1249_s10 = sphi %s1291_s10, %s1815_s10   ;;  %s1245_s9 = sphi %s1289_s9, %s1814_s9  }
   0x7   : > { %s1314_s15 = sadd.s32 1, %s1257_s12   ;;  %s47_s16 = sadd.s32 1, %s1253_s11 }
   0x8   : > { %s44_s17 = ssub.s32 %s1257_s12, %s1314_s15  ;;  %p54_p0 = scmp.ne.s32.totalorder %s1253_s11, %s1249_s10 }
   0x9   : > { %p45_p1 = scmp.eq.s32.totalorder %s44_s17, 0  ;;  %p55_p2 = scmp.eq.s32.totalorder %s1257_s12, 0 }
   0xa   : > { %p60_p3 = scmp.ne.s32.totalorder %s1249_s10, %s1245_s9  ;;  %p1798_p4 = scmp.eq.s32.totalorder %s1310_s13, 0 }
   0xb   : > { %s1326_s18 = scalar_select %p45_p1, %s1253_s11, %s47_s16  }
   0xc   : > { %p1328_p5 = por %p55_p2, %p54_p0  ;;  %p1334_p6 = por %p1798_p4, %p60_p3 }
   0xd   : > { %p84_p7 = scmp.eq.s32.totalorder %s1310_s13, 1  ;;  %p90_p8 = scmp.eq.s32.totalorder %s990_s14, 1 }
   0xe   : > { %s1802_s20 = scalar_select %p1334_p6, 1, 0 }
   0xf   : > { %p991_p9 = scmp.ge.s32.totalorder %s1257_s12, 1  ;;  %p97_p10 = scmp.lt.s32.totalorder %s1257_s12, 3 }
  0x10   : > { %p1341_p11 = por %p84_p7, %p54_p0  ;;  %p1345_p12 = por %p90_p8, %p60_p3 }
  0x11   : > { %p1349_p13 = pnand %p991_p9, %p97_p10  ;;  %p1080_p4 = scmp.lt.s32.totalorder %s1257_s12, 2 }
  0x12   : > { %s1803_s21 = scalar_select %p1341_p11, 1, 0 }
  0x13   : > { %s1804_s22 = scalar_select %p1345_p12, 1, 0 }
  0x14   : > { %p1067_p2 = pneg %p1349_p13  ;;  %s119_s24 = sand.u32 1, %s1253_s11  }
  0x15   : > { %s1057_s25 = sshll.u32 %s1257_s12, 10  ;;  %p1806_p6 = scmp.eq.s32.totalorder %s1310_s13, 0 }
  0x16   : > { %p1363_p7 = pnand %p1080_p4, %p1328_p5  ;;  %s994_s27 = sshll.u32 %s119_s24, 6 }
  0x17   : > { %p1068_p0 = pnand %p1067_p2, %p1806_p6  ;;  %s1144_s30 = scalar_lea.hbm %s1795_s0, 16 }
  0x18   : > { %p1145_p3 = scmp.ne.s32.totalorder %s1795_s0, %s1144_s30  ;;  %p1151_p6 = scmp.lt.u32.totalorder %s1144_s30, %s1795_s0 }
  0x19   : > { %p1146_p8 = pneg %p1068_p0 }
  0x1b   : > { %p1147_p9 = pnand %p1146_p8, %p1145_p3 }
  0x1d   : > { %p1148_p10 = pneg %p1147_p9 }
  0x1f   : > { %p1153_p4 = pnand %p1151_p6, %p1148_p10 }
  0x21   : > { %1156 = shalt.err (!%p1153_p4)
}
  0x22   : > { %s1259_s7 = smov [#allocation3]   ;;  %s1382_s19 = scalar_lea.hbm %s1796_s1, %s1057_s25 }
  0x23   : > { %1070 = dma.hbm_to_smem (!%p1068_p0), %s1795_s0, 16, %s1259_s7, [#allocation6]  }
  0x24   : > { %s123_s28 = scalar_lea.vmem [#allocation7], %s994_s27  ;;  %s1386_s30 = scalar_lea.sflag [#allocation4], %s119_s24 }
  0x25   : > { %s130_s29 = sshll.u32 %s123_s28, 4  ;;  %s1157_s3 = scalar_lea.hbm %s1382_s19, 1024  ;;  %s1384_s29 = int_to_ptr.vmem [resolvable:$true] %s130_s29 }
  0x26   : > { %p1158_p5 = scmp.ne.s32.totalorder %s1382_s19, %s1157_s3  ;;  %p1159_p2 = pneg %p1363_p7 }
  0x27   : > { %s1162_s5 = scalar_lea.hbm %s1796_s1, 2048  ;;  %p1163_p8 = scmp.lt.u32.totalorder %s1382_s19, %s1796_s1 }
  0x28   : > { %p1160_p0 = pnand %p1159_p2, %p1158_p5  ;;  %p1164_p9 = scmp.lt.u32.totalorder %s1162_s5, %s1157_s3 }
  0x29   : > { %p1166_p6 = scmp.lt.u32.totalorder %s1157_s3, %s1382_s19 }
  0x2a   : > { %p1161_p3 = pneg %p1160_p0  ;;  %p1165_p10 = por %p1164_p9, %p1163_p8 }
  0x2c   : > { %p1167_p4 = por %p1166_p6, %p1165_p10 }
  0x2e   : > { %p1168_p1 = pnand %p1167_p4, %p1161_p3 }
  0x30   : > { %1171 = shalt.err (!%p1168_p1)
}
  0x31   : > { %s1172_s24 = scalar_lea.vmem %s1384_s29, 1024  ;;  %s1260_s27 = smov [#allocation7]  }
  0x32   : > { %p1173_p5 = scmp.ne.s32.totalorder %s1384_s29, %s1172_s24  ;;  %s1177_s8 = sshll.u32 %s1260_s27, 4  ;;  %s1178_s8 = int_to_ptr.vmem [resolvable:$false] %s1177_s8 }
  0x33   : > { %s1179_s14 = scalar_lea.vmem %s1178_s8, 2048  ;;  %p1180_p11 = scmp.lt.s32.totalorder %s1384_s29, %s1178_s8 }
  0x34   : > { %p1175_p0 = pnand %p1173_p5, %p1159_p2  ;;  %p1181_p8 = scmp.lt.s32.totalorder %s1179_s14, %s1172_s24 }
  0x36   : > { %p1176_p12 = pneg %p1175_p0  ;;  %p1182_p9 = por %p1181_p8, %p1180_p11 }
  0x38   : > { %p1183_p10 = pnand %p1182_p9, %p1176_p12 }
  0x3a   : > { %1186 = shalt.err (!%p1183_p10)
}
  0x3b   : > { %s1261_s16 = smov 128   ;;  %s1262_s17 = smov 8  }
  0x3c   : > { %1074 = dma.hbm_to_vmem [thread:$0]  (!%p1363_p7), %s1382_s19, 1024, %s1384_s29, %s1386_s30, %s1261_s16, %s1261_s16, %s1262_s17  }
  0x3d   : > { %142 = sbr.rel (%p1349_p13) target bundleno = 541 (0x21d), region = 28  ;;  %p1808_p1 = scmp.eq.s32.totalorder (!%p1349_p13), %s1310_s13, 0 }
  0x44   : > { %1232 = dma.done.wait (%p1808_p1), [#allocation6], 16   ;;  %p1809_p2 = pmov %p1808_p1 }
  0x45   : > { %s1421_s28 = sand.u32 1, %s1249_s10   ;;  %p1810_p11 = scmp.ne.s32.totalorder %s1802_s20, 0 }
  0x46   : > { %1234 = vsyncadd (%p1809_p2), [#allocation6], 4294967280  ;;  %s999_s3 = sshll.u32 %s1421_s28, 6  ;;  %s149_s25 = scalar_lea.sflag [#allocation4], %s1421_s28 }
  0x47   : > { %s1427_s26 = scalar_lea.vmem [#allocation7], %s999_s3 }
  0x48   : > { %1236 = dma.done.wait (%p1810_p11), %s149_s25, 1024  }
  0x49   : > { %1238 = vsyncadd (%p1810_p11), %s149_s25, 4294966272 }
  0x4a   : > { %157 = sfence }
  0x4b   : > { %v174_v0 = vld [vmem:[%s1427_s26] sm:$0xff]  ;;  %v176_v1 = vld [vmem:[%s1427_s26 + $0x10] sm:$0xff]  ;;  %vm182_vm0 = vcmask 130048   ;;  %vm199_vm1 = vcmask 179200   ;;  %v175_v7 = vld [vmem:[%s1427_s26 + $0x8] sm:$0xff]  ;;  %v1263_v19 = vmov 0.0  }
  0x4c   : > { %v178_v2 = vld [vmem:[%s1427_s26 + $0x20] sm:$0xff]  ;;  %v180_v3 = vld [vmem:[%s1427_s26 + $0x30] sm:$0xff]  ;;  %v183_v4 = vsel %vm182_vm0, %v174_v0, 0.0  ;;  %v184_v5 = vsel %vm182_vm0, %v176_v1, 0.0  ;;  %v177_v8 = vld [vmem:[%s1427_s26 + $0x18] sm:$0xff]  ;;  %v190_v12 = vsel %vm182_vm0, %v175_v7, 0.0 }
  0x4d   : > { %v186_v6 = vsel %vm182_vm0, %v178_v2, 0.0  ;;  %v185_v9 = vadd.f32 %v184_v5, %v183_v4  ;;  %v179_v10 = vld [vmem:[%s1427_s26 + $0x28] sm:$0xff]  ;;  %v181_v11 = vld [vmem:[%s1427_s26 + $0x38] sm:$0xff]  ;;  %v191_v13 = vsel %vm182_vm0, %v177_v8, 0.0  ;;  %v188_v14 = vsel %vm182_vm0, %v180_v3, 0.0  ;;  %200 = vst.msk [vmem:[#allocation2] sm:$0xff] %vm199_vm1, %v1263_v19 }
  0x4e   : > { %v192_v15 = vadd.f32 %v191_v13, %v190_v12  ;;  %v193_v16 = vsel %vm182_vm0, %v179_v10, 0.0  ;;  %v195_v18 = vsel %vm182_vm0, %v181_v11, 0.0  ;;  %201 = vst.msk [vmem:[#allocation2 + $0x8] sm:$0xff] %vm199_vm1, %v1263_v19  ;;  %vm202_vm2 = vcmask 177152   ;;  %s1264_s20 = smov 3   ;;  %s1002_s23 = sld [smem:[#allocation3 + $0x2]] }
  0x4f   : > { %v187_v17 = vadd.f32 %v186_v6, %v185_v9  ;;  %203 = vst.msk [vmem:[#allocation2 + $0x10] sm:$0x3f] %vm202_vm2, %v1263_v19  ;;  %vm212_vm3 = vcmask 154648   ;;  %s1001_s19 = sld [smem:[#allocation3 + $0x1]]  ;;  %s1451_s29 = sld [smem:[#allocation3 + $0x3]] }
  0x50   : > { %v194_v20 = vadd.f32 %v193_v16, %v192_v15  ;;  %s1453_s30 = sld [smem:[#allocation3 + $0x4]]  ;;  %s1460_s4 = sld [smem:[#allocation3 + $0x5]] }
  0x51   : > { %v189_v21 = vadd.f32 %v188_v14, %v187_v17  ;;  %s1265_s5 = smov 126   ;;  %s1266_s6 = smov 127  }
  0x52   : > { %v196_v22 = vadd.f32 %v195_v18, %v194_v20  ;;  %s1469_s7 = sld [smem:[#allocation3 + $0x6]]  ;;  %s1267_s24 = smov 125  }
  0x53   : > { %v197_v23 = vmul.f32 0.25, %v189_v21  ;;  %s1476_s27 = sld [smem:[#allocation3 + $0x8]]  ;;  %s1268_s8 = smov 124  }
  0x54   : > { %v198_v24 = vmul.f32 0.25, %v196_v22  ;;  %v238_v27 = vstv %s1002_s23  ;;  %s1483_s14 = sld [smem:[#allocation3 + $0x9]]  ;;  %s1269_s16 = smov 123  }
  0x55   : > { %206 = vrot.lane.b32.xlu0 %v197_v23, %s1264_s20  ;;  %v224_v28 = vstv %s1001_s19  ;;  %v252_v32 = vstv %s1451_s29  ;;  %s1010_s17 = sld [smem:[#allocation3 + $0xa]]  ;;  %s1270_s25 = smov 122  }
  0x56   : > { %v266_v36 = vstv %s1453_s30  ;;  %v280_v39 = vstv %s1460_s4  ;;  %s1012_s23 = sld [smem:[#allocation3 + $0xc]]  ;;  %s1013_s19 = sld [smem:[#allocation3 + $0xd]] }
  0x57   : > { %s1015_s29 = sld [smem:[#allocation3 + $0xf]]  ;;  %s1016_s30 = sld [smem:[#allocation3 + $0x10]] }
  0x58   : > { %v294_v42 = vstv %s1469_s7  ;;  %s1017_s4 = sld [smem:[#allocation3 + $0x11]]  ;;  %s1018_s7 = sld [smem:[#allocation3 + $0x12]] }
  0x59   : > { %208 = vrot.lane.b32.xlu0 %v198_v24, %s1264_s20  ;;  %v316_v46 = vstv %s1476_s27  ;;  %s1011_s20 = sld [smem:[#allocation3 + $0xb]]  ;;  %p1811_p13 = scmp.ne.s32.totalorder %s1803_s21, 0 }
  0x5a   : > { %v330_v49 = vstv %s1483_s14  ;;  %s1019_s27 = sld [smem:[#allocation3 + $0x13]]  ;;  %s1020_s14 = sld [smem:[#allocation3 + $0x14]] }
  0x5b   : > { %v344_v52 = vstv %s1010_s17  ;;  %s1022_s17 = sld [smem:[#allocation3 + $0x16]] }
  0x5c   : > { %v372_v59 = vstv %s1012_s23  ;;  %v386_v62 = vstv %s1013_s19  ;;  %s1024_s23 = sld [smem:[#allocation3 + $0x18]]  ;;  %s1025_s19 = sld [smem:[#allocation3 + $0x19]] }
  0x5d   : > { %v408_v2 = vstv %s1015_s29  ;;  %v422_v5 = vstv %s1016_s30  ;;  %s1026_s29 = sld [smem:[#allocation3 + $0x1a]]  ;;  %s1027_s30 = sld [smem:[#allocation3 + $0x1b]] }
  0x5e   : > { %v436_v8 = vstv %s1017_s4  ;;  %v450_v12 = vstv %s1018_s7  ;;  %s1029_s4 = sld [smem:[#allocation3 + $0x1d]]  ;;  %s1030_s7 = sld [smem:[#allocation3 + $0x1e]] }
  0x5f   : > { %v358_v56 = vstv %s1011_s20  ;;  %s1023_s20 = sld [smem:[#allocation3 + $0x17]] }
  0x60   : > { %v464_v15 = vstv %s1019_s27  ;;  %v478_v18 = vstv %s1020_s14  ;;  %s1031_s27 = sld [smem:[#allocation3 + $0x1f]]  ;;  %s1032_s14 = sld [smem:[#allocation3 + $0x20]] }
  0x61   : > { %v500_v22 = vstv %s1022_s17  ;;  %s1587_s17 = sld [smem:[#allocation3 + $0x21]] }
  0xc7   : > { %v207_v25 = vpop.permute.xlu0 %206 }
  0xc8   : > { %213 = vst.msk [vmem:[#allocation2 + $0x3] sm:$0xff] %vm212_vm3, %v207_v25  ;;  %v514_v25 = vstv %s1023_s20  ;;  %s1593_s20 = sld [smem:[#allocation3 + $0x22]] }
  0xcb   : > { %v209_v26 = vpop.permute.xlu0 %208 }
  0xcc   : > { %214 = vst.msk [vmem:[#allocation2 + $0xb] sm:$0xff] %vm212_vm3, %v209_v26 }
  0xcf   : > { %v1455_v29 = vld [vmem:[#allocation2] sm:$0xff] }
  0xd0   : > { %v239_v30 = vmul.f32 %v238_v27, %v1455_v29  ;;  %v225_v31 = vmul.f32 %v224_v28, %v1455_v29  ;;  %v253_v35 = vmul.f32 %v252_v32, %v1455_v29  ;;  %v267_v37 = vmul.f32 %v266_v36, %v1455_v29  ;;  %v1489_v45 = vld [vmem:[#allocation2 + $0x1] sm:$0xff] }
  0xd1   : > { %v281_v40 = vmul.f32 %v280_v39, %v1455_v29  ;;  %v295_v43 = vmul.f32 %v294_v42, %v1455_v29  ;;  %v317_v47 = vmul.f32 %v316_v46, %v1489_v45  ;;  %v331_v50 = vmul.f32 %v330_v49, %v1489_v45  ;;  %v1519_v1 = vld [vmem:[#allocation2 + $0x2] sm:$0xff] }
  0xd2   : > { %243 = vrot.lane.b32.xlu0 %v239_v30, %s1265_s5  ;;  %229 = vrot.lane.b32.xlu1 %v225_v31, %s1266_s6  ;;  %v345_v54 = vmul.f32 %v344_v52, %v1489_v45  ;;  %v359_v57 = vmul.f32 %v358_v56, %v1489_v45  ;;  %v373_v60 = vmul.f32 %v372_v59, %v1489_v45  ;;  %v1547_v21 = vld [vmem:[#allocation2 + $0x3] sm:$0xff] }
  0xd3   : > { %v1464_v33 = vld [vmem:[#allocation2 + $0x8] sm:$0xff]  ;;  %v387_v63 = vmul.f32 %v386_v62, %v1489_v45  ;;  %v409_v3 = vmul.f32 %v408_v2, %v1519_v1  ;;  %v423_v6 = vmul.f32 %v422_v5, %v1519_v1  ;;  %v437_v10 = vmul.f32 %v436_v8, %v1519_v1 }
  0xd4   : > { %v226_v34 = vmul.f32 %v224_v28, %v1464_v33  ;;  %v240_v38 = vmul.f32 %v238_v27, %v1464_v33  ;;  %v254_v41 = vmul.f32 %v252_v32, %v1464_v33  ;;  %v268_v44 = vmul.f32 %v266_v36, %v1464_v33  ;;  %v1501_v53 = vld [vmem:[#allocation2 + $0x9] sm:$0xff] }
  0xd5   : > { %v282_v48 = vmul.f32 %v280_v39, %v1464_v33  ;;  %v296_v51 = vmul.f32 %v294_v42, %v1464_v33  ;;  %v318_v55 = vmul.f32 %v316_v46, %v1501_v53  ;;  %v332_v58 = vmul.f32 %v330_v49, %v1501_v53  ;;  %v1529_v9 = vld [vmem:[#allocation2 + $0xa] sm:$0xff] }
  0xd6   : > { %257 = vrot.lane.b32.xlu0 %v253_v35, %s1267_s24  ;;  %231 = vrot.lane.b32.xlu1 %v226_v34, %s1266_s6  ;;  %v346_v61 = vmul.f32 %v344_v52, %v1501_v53  ;;  %v360_v0 = vmul.f32 %v358_v56, %v1501_v53  ;;  %v374_v4 = vmul.f32 %v372_v59, %v1501_v53  ;;  %v528_v28 = vstv %s1024_s23  ;;  %v1557_v30 = vld [vmem:[#allocation2 + $0xb] sm:$0xff]  ;;  %s215_s23 = sld [smem:[#allocation3]] }
  0xd7   : > { %v388_v7 = vmul.f32 %v386_v62, %v1501_v53  ;;  %v410_v11 = vmul.f32 %v408_v2, %v1529_v9  ;;  %v451_v13 = vmul.f32 %v450_v12, %v1519_v1  ;;  %v424_v14 = vmul.f32 %v422_v5, %v1529_v9  ;;  %v1585_v52 = vld [vmem:[#allocation2 + $0xc] sm:$0xff] }
  0xd8   : > { %v465_v16 = vmul.f32 %v464_v15, %v1519_v1  ;;  %v438_v17 = vmul.f32 %v436_v8, %v1529_v9  ;;  %v479_v19 = vmul.f32 %v478_v18, %v1519_v1  ;;  %v452_v20 = vmul.f32 %v450_v12, %v1529_v9 }
  0xd9   : > { %v501_v23 = vmul.f32 %v500_v22, %v1547_v21  ;;  %v466_v24 = vmul.f32 %v464_v15, %v1529_v9  ;;  %v515_v26 = vmul.f32 %v514_v25, %v1547_v21  ;;  %v480_v27 = vmul.f32 %v478_v18, %v1529_v9 }
  0xda   : > { %271 = vrot.lane.b32.xlu0 %v267_v37, %s1268_s8  ;;  %245 = vrot.lane.b32.xlu1 %v240_v38, %s1265_s5  ;;  %v529_v31 = vmul.f32 %v528_v28, %v1547_v21  ;;  %v502_v32 = vmul.f32 %v500_v22, %v1557_v30  ;;  %v542_v34 = vstv %s1025_s19  ;;  %v516_v36 = vmul.f32 %v514_v25, %v1557_v30  ;;  %s1600_s19 = sld [smem:[#allocation3 + $0x24]]  ;;  %v1632_v22 = vld [vmem:[#allocation2 + $0xd] sm:$0xff] }
  0xdb   : > { %v543_v35 = vmul.f32 %v542_v34, %v1547_v21  ;;  %v556_v37 = vstv %s1026_s29  ;;  %v530_v39 = vmul.f32 %v528_v28, %v1557_v30  ;;  %v544_v42 = vmul.f32 %v542_v34, %v1557_v30  ;;  %s1607_s29 = sld [smem:[#allocation3 + $0x25]] }
  0xdc   : > { %v557_v38 = vmul.f32 %v556_v37, %v1547_v21  ;;  %v634_v56 = vstv %s1032_s14  ;;  %v648_v59 = vstv %s1587_s17  ;;  %v662_v62 = vstv %s1593_s20  ;;  %s1643_s14 = sld [smem:[#allocation3 + $0x29]]  ;;  %s1650_s17 = sld [smem:[#allocation3 + $0x2b]] }
  0xdd   : > { %v218_v2 = vstv %s215_s23  ;;  %s1659_s20 = sld [smem:[#allocation3 + $0x2c]]  ;;  %s1668_s23 = sld [smem:[#allocation3 + $0x2d]] }
  0xde   : > { %285 = vrot.lane.b32.xlu0 %v281_v40, %s1269_s16  ;;  %259 = vrot.lane.b32.xlu1 %v254_v41, %s1267_s24  ;;  %v570_v40 = vstv %s1027_s30  ;;  %s1616_s30 = sld [smem:[#allocation3 + $0x26]]  ;;  %v219_v5 = vmul.f32 %v218_v2, %v1455_v29 }
  0xdf   : > { %v571_v41 = vmul.f32 %v570_v40, %v1547_v21 }
  0xe1   : > { %v698_v12 = vstv %s1607_s29  ;;  %s1685_s29 = sld [smem:[#allocation3 + $0x2f]] }
  0xe2   : > { %299 = vrot.lane.b32.xlu0 %v295_v43, %s1270_s25  ;;  %273 = vrot.lane.b32.xlu1 %v268_v44, %s1268_s8  ;;  %v1575_v43 = vld [vmem:[#allocation2 + $0x4] sm:$0xff]  ;;  %v592_v44 = vstv %s1029_s4  ;;  %s1624_s4 = sld [smem:[#allocation3 + $0x27]] }
  0xe3   : > { %v593_v46 = vmul.f32 %v592_v44, %v1575_v43 }
  0xe6   : > { %321 = vrot.lane.b32.xlu0 %v317_v47, %s1266_s6  ;;  %287 = vrot.lane.b32.xlu1 %v282_v48, %s1269_s16  ;;  %v558_v47 = vmul.f32 %v556_v37, %v1557_v30  ;;  %v606_v48 = vstv %s1030_s7  ;;  %s1634_s7 = sld [smem:[#allocation3 + $0x28]] }
  0xe7   : > { %v607_v49 = vmul.f32 %v606_v48, %v1575_v43 }
  0xe8   : > { %v726_v28 = vstv %s1624_s4  ;;  %s1694_s4 = sld [smem:[#allocation3 + $0x30]] }
  0xea   : > { %335 = vrot.lane.b32.xlu0 %v331_v50, %s1265_s5  ;;  %301 = vrot.lane.b32.xlu1 %v296_v51, %s1270_s25  ;;  %v572_v50 = vmul.f32 %v570_v40, %v1557_v30  ;;  %v620_v51 = vstv %s1031_s27  ;;  %s1638_s27 = sld [smem:[#allocation3 + $0x7]] }
  0xec   : > { %v740_v37 = vstv %s1634_s7  ;;  %s1058_s7 = sshll.u32 %s1310_s13, 10  ;;  %s892_s13 = scalar_lea.sflag [#allocation5], %s1421_s28 }
  0xee   : > { %349 = vrot.lane.b32.xlu0 %v345_v54, %s1267_s24  ;;  %323 = vrot.lane.b32.xlu1 %v318_v55, %s1266_s6  ;;  %v621_v54 = vmul.f32 %v620_v51, %v1575_v43  ;;  %v594_v55 = vmul.f32 %v592_v44, %v1585_v52 }
  0xf2   : > { %363 = vrot.lane.b32.xlu0 %v359_v57, %s1268_s8  ;;  %337 = vrot.lane.b32.xlu1 %v332_v58, %s1265_s5  ;;  %v635_v57 = vmul.f32 %v634_v56, %v1575_v43  ;;  %v608_v58 = vmul.f32 %v606_v48, %v1585_v52 }
  0xf6   : > { %377 = vrot.lane.b32.xlu0 %v373_v60, %s1269_s16  ;;  %351 = vrot.lane.b32.xlu1 %v346_v61, %s1267_s24  ;;  %v649_v60 = vmul.f32 %v648_v59, %v1575_v43  ;;  %v622_v61 = vmul.f32 %v620_v51, %v1585_v52 }
  0xfa   : > { %391 = vrot.lane.b32.xlu0 %v387_v63, %s1270_s25  ;;  %365 = vrot.lane.b32.xlu1 %v360_v0, %s1268_s8  ;;  %v663_v63 = vmul.f32 %v662_v62, %v1575_v43  ;;  %v636_v0 = vmul.f32 %v634_v56, %v1585_v52  ;;  %v728_v56 = vmul.f32 %v726_v28, %v1632_v22 }
  0xfe   : > { %413 = vrot.lane.b32.xlu0 %v409_v3, %s1266_s6  ;;  %379 = vrot.lane.b32.xlu1 %v374_v4, %s1269_s16  ;;  %v1613_v3 = vld [vmem:[#allocation2 + $0x5] sm:$0xff]  ;;  %v684_v4 = vstv %s1600_s19  ;;  %s1676_s19 = sld [smem:[#allocation3 + $0x2e]] }
  0xff   : > { %v685_v8 = vmul.f32 %v684_v4, %v1613_v3  ;;  %v686_v25 = vmul.f32 %v684_v4, %v1632_v22  ;;  %v727_v34 = vmul.f32 %v726_v28, %v1613_v3 }
 0x102   : > { %427 = vrot.lane.b32.xlu0 %v423_v6, %s1265_s5  ;;  %393 = vrot.lane.b32.xlu1 %v388_v7, %s1270_s25 }
 0x106   : > { %441 = vrot.lane.b32.xlu0 %v437_v10, %s1267_s24  ;;  %415 = vrot.lane.b32.xlu1 %v410_v11, %s1266_s6  ;;  %v650_v10 = vmul.f32 %v648_v59, %v1585_v52 }
 0x10a   : > { %455 = vrot.lane.b32.xlu0 %v451_v13, %s1268_s8  ;;  %429 = vrot.lane.b32.xlu1 %v424_v14, %s1265_s5  ;;  %v220_v14 = vmul.f32 %v218_v2, %v1464_v33  ;;  %v790_v2 = vstv %s1659_s20  ;;  %s1741_s20 = scalar_lea.hbm %s1797_s2, %s1058_s7 }
 0x10e   : > { %469 = vrot.lane.b32.xlu0 %v465_v16, %s1269_s16  ;;  %443 = vrot.lane.b32.xlu1 %v438_v17, %s1267_s24  ;;  %v699_v16 = vmul.f32 %v698_v12, %v1613_v3  ;;  %v664_v17 = vmul.f32 %v662_v62, %v1585_v52  ;;  %v742_v62 = vmul.f32 %v740_v37, %v1632_v22 }
 0x112   : > { %483 = vrot.lane.b32.xlu0 %v479_v19, %s1270_s25  ;;  %457 = vrot.lane.b32.xlu1 %v452_v20, %s1268_s8  ;;  %v712_v20 = vstv %s1616_s30  ;;  %s1689_s30 = sld [smem:[#allocation3 + $0xe]] }
 0x113   : > { %v714_v44 = vmul.f32 %v712_v20, %v1632_v22 }
 0x116   : > { %505 = vrot.lane.b32.xlu0 %v501_v23, %s1266_s6  ;;  %471 = vrot.lane.b32.xlu1 %v466_v24, %s1269_s16  ;;  %v713_v24 = vmul.f32 %v712_v20, %v1613_v3 }
 0x11a   : > { %519 = vrot.lane.b32.xlu0 %v515_v26, %s1265_s5  ;;  %485 = vrot.lane.b32.xlu1 %v480_v27, %s1270_s25 }
 0x11e   : > { %533 = vrot.lane.b32.xlu0 %v529_v31, %s1267_s24  ;;  %507 = vrot.lane.b32.xlu1 %v502_v32, %s1266_s6 }
 0x122   : > { %547 = vrot.lane.b32.xlu0 %v543_v35, %s1268_s8  ;;  %521 = vrot.lane.b32.xlu1 %v516_v36, %s1265_s5  ;;  %v700_v35 = vmul.f32 %v698_v12, %v1632_v22 }
 0x126   : > { %561 = vrot.lane.b32.xlu0 %v557_v38, %s1269_s16  ;;  %535 = vrot.lane.b32.xlu1 %v530_v39, %s1267_s24  ;;  %v310_v38 = vstv %s1638_s27 }
 0x12a   : > { %575 = vrot.lane.b32.xlu0 %v571_v41, %s1270_s25  ;;  %549 = vrot.lane.b32.xlu1 %v544_v42, %s1268_s8  ;;  %v741_v42 = vmul.f32 %v740_v37, %v1613_v3 }
 0x12e   : > { %597 = vrot.lane.b32.xlu0 %v593_v46, %s1266_s6  ;;  %563 = vrot.lane.b32.xlu1 %v558_v47, %s1269_s16  ;;  %v311_v47 = vmul.f32 %v310_v38, %v1489_v45 }
 0x132   : > { %611 = vrot.lane.b32.xlu0 %v607_v49, %s1265_s5  ;;  %577 = vrot.lane.b32.xlu1 %v572_v50, %s1270_s25  ;;  %v754_v49 = vstv %s1643_s14 }
 0x136   : > { %625 = vrot.lane.b32.xlu0 %v621_v54, %s1267_s24  ;;  %599 = vrot.lane.b32.xlu1 %v594_v55, %s1266_s6  ;;  %v755_v55 = vmul.f32 %v754_v49, %v1613_v3 }
 0x13a   : > { %639 = vrot.lane.b32.xlu0 %v635_v57, %s1268_s8  ;;  %613 = vrot.lane.b32.xlu1 %v608_v58, %s1265_s5  ;;  %v1665_v57 = vld [vmem:[#allocation2 + $0x6] sm:$0xff]  ;;  %v776_v58 = vstv %s1650_s17 }
 0x13e   : > { %653 = vrot.lane.b32.xlu0 %v649_v60, %s1269_s16  ;;  %627 = vrot.lane.b32.xlu1 %v622_v61, %s1267_s24  ;;  %v777_v61 = vmul.f32 %v776_v58, %v1665_v57 }
 0x142   : > { %667 = vrot.lane.b32.xlu0 %v663_v63, %s1270_s25  ;;  %641 = vrot.lane.b32.xlu1 %v636_v0, %s1268_s8  ;;  %v312_v63 = vmul.f32 %v310_v38, %v1501_v53  ;;  %v846_v38 = vstv %s1694_s4 }
 0x144   : > { %v230_v6 = vpop.permute.xlu1 %229  ;;  %v244_v7 = vpop.permute.xlu0 %243 }
 0x145   : > { %v235_v11 = vadd.f32 %v230_v6, %v219_v5 }
 0x146   : > { %689 = vrot.lane.b32.xlu0 %v685_v8, %s1266_s6  ;;  %655 = vrot.lane.b32.xlu1 %v650_v10, %s1269_s16  ;;  %v756_v8 = vmul.f32 %v754_v49, %v1632_v22  ;;  %v804_v10 = vstv %s1668_s23  ;;  %s1271_s23 = smov [#allocation8]  }
 0x147   : > { %v249_v13 = vadd.f32 %v244_v7, %v235_v11  ;;  %v791_v7 = vmul.f32 %v790_v2, %v1665_v57  ;;  %v1683_v11 = vld [vmem:[#allocation2 + $0xe] sm:$0xff] }
 0x148   : > { %v232_v15 = vpop.permute.xlu1 %231  ;;  %v258_v29 = vpop.permute.xlu0 %257 }
 0x149   : > { %v236_v18 = vadd.f32 %v232_v15, %v220_v14  ;;  %v263_v19 = vadd.f32 %v258_v29, %v249_v13  ;;  %v805_v14 = vmul.f32 %v804_v10, %v1665_v57  ;;  %v778_v15 = vmul.f32 %v776_v58, %v1683_v11 }
 0x14a   : > { %703 = vrot.lane.b32.xlu0 %v699_v16, %s1265_s5  ;;  %669 = vrot.lane.b32.xlu1 %v664_v17, %s1270_s25  ;;  %v818_v16 = vstv %s1676_s19  ;;  %s1191_s19 = sshll.u32 %s1271_s23, 4  ;;  %s1192_s19 = int_to_ptr.vmem [resolvable:$false] %s1191_s19 }
 0x14b   : > { %v819_v20 = vmul.f32 %v818_v16, %v1665_v57 }
 0x14c   : > { %v246_v33 = vpop.permute.xlu1 %245  ;;  %v272_v23 = vpop.permute.xlu0 %271 }
 0x14d   : > { %v250_v26 = vadd.f32 %v246_v33, %v236_v18  ;;  %v277_v27 = vadd.f32 %v272_v23, %v263_v19  ;;  %v792_v33 = vmul.f32 %v790_v2, %v1683_v11 }
 0x14e   : > { %717 = vrot.lane.b32.xlu0 %v713_v24, %s1267_s24  ;;  %691 = vrot.lane.b32.xlu1 %v686_v25, %s1266_s6  ;;  %v832_v24 = vstv %s1685_s29  ;;  %v402_v25 = vstv %s1689_s30  ;;  %s1193_s29 = scalar_lea.vmem %s1192_s19, 2048 }
 0x150   : > { %v260_v31 = vpop.permute.xlu1 %259  ;;  %v286_v32 = vpop.permute.xlu0 %285 }
 0x151   : > { %v264_v36 = vadd.f32 %v260_v31, %v250_v26  ;;  %v291_v39 = vadd.f32 %v286_v32, %v277_v27  ;;  %v833_v32 = vmul.f32 %v832_v24, %v1665_v57 }
 0x152   : > { %731 = vrot.lane.b32.xlu0 %v727_v34, %s1268_s8  ;;  %705 = vrot.lane.b32.xlu1 %v700_v35, %s1265_s5  ;;  %v806_v34 = vmul.f32 %v804_v10, %v1683_v11 }
 0x154   : > { %v274_v40 = vpop.permute.xlu1 %273  ;;  %v300_v41 = vpop.permute.xlu0 %299 }
 0x155   : > { %v278_v46 = vadd.f32 %v274_v40, %v264_v36  ;;  %v305_v48 = vadd.f32 %v300_v41, %v291_v39  ;;  %v403_v36 = vmul.f32 %v402_v25, %v1519_v1 }
 0x156   : > { %745 = vrot.lane.b32.xlu0 %v741_v42, %s1269_s16  ;;  %719 = vrot.lane.b32.xlu1 %v714_v44, %s1267_s24  ;;  %v847_v44 = vmul.f32 %v846_v38, %v1665_v57 }
 0x157   : > { %v313_v50 = vadd.f32 %v311_v47, %v305_v48 }
 0x158   : > { %v288_v51 = vpop.permute.xlu1 %287  ;;  %v322_v54 = vpop.permute.xlu0 %321 }
 0x159   : > { %v292_v45 = vadd.f32 %v288_v51, %v278_v46  ;;  %v327_v53 = vadd.f32 %v322_v54, %v313_v50  ;;  %v820_v46 = vmul.f32 %v818_v16, %v1683_v11  ;;  %v834_v50 = vmul.f32 %v832_v24, %v1683_v11 }
 0x15a   : > { %759 = vrot.lane.b32.xlu0 %v755_v55, %s1270_s25  ;;  %733 = vrot.lane.b32.xlu1 %v728_v56, %s1268_s8  ;;  %v404_v51 = vmul.f32 %v402_v25, %v1529_v9 }
 0x15c   : > { %v302_v59 = vpop.permute.xlu1 %301  ;;  %v336_v60 = vpop.permute.xlu0 %335 }
 0x15d   : > { %v306_v0 = vadd.f32 %v302_v59, %v292_v45  ;;  %v341_v29 = vadd.f32 %v336_v60, %v327_v53  ;;  %v848_v45 = vmul.f32 %v846_v38, %v1683_v11 }
 0x15e   : > { %781 = vrot.lane.b32.xlu0 %v777_v61, %s1266_s6  ;;  %747 = vrot.lane.b32.xlu1 %v742_v62, %s1269_s16 }
 0x15f   : > { %v314_v4 = vadd.f32 %v312_v63, %v306_v0 }
 0x160   : > { %v324_v5 = vpop.permute.xlu1 %323  ;;  %v350_v6 = vpop.permute.xlu0 %349 }
 0x161   : > { %v355_v17 = vadd.f32 %v350_v6, %v341_v29  ;;  %v328_v26 = vadd.f32 %v324_v5, %v314_v4 }
 0x162   : > { %795 = vrot.lane.b32.xlu0 %v791_v7, %s1265_s5  ;;  %761 = vrot.lane.b32.xlu1 %v756_v8, %s1270_s25 }
 0x164   : > { %v338_v12 = vpop.permute.xlu1 %337  ;;  %v364_v13 = vpop.permute.xlu0 %363 }
 0x165   : > { %v369_v23 = vadd.f32 %v364_v13, %v355_v17  ;;  %v342_v35 = vadd.f32 %v338_v12, %v328_v26 }
 0x166   : > { %809 = vrot.lane.b32.xlu0 %v805_v14, %s1267_s24  ;;  %783 = vrot.lane.b32.xlu1 %v778_v15, %s1266_s6  ;;  %s1028_s6 = sld [smem:[#allocation3 + $0x1c]] }
 0x168   : > { %v352_v18 = vpop.permute.xlu1 %351  ;;  %v378_v19 = vpop.permute.xlu0 %377 }
 0x169   : > { %v383_v27 = vadd.f32 %v378_v19, %v369_v23  ;;  %v356_v39 = vadd.f32 %v352_v18, %v342_v35 }
 0x16a   : > { %823 = vrot.lane.b32.xlu0 %v819_v20, %s1268_s8  ;;  %797 = vrot.lane.b32.xlu1 %v792_v33, %s1265_s5  ;;  %s1021_s5 = sld [smem:[#allocation3 + $0x15]] }
 0x16c   : > { %v366_v28 = vpop.permute.xlu1 %365  ;;  %v392_v31 = vpop.permute.xlu0 %391 }
 0x16d   : > { %v397_v37 = vadd.f32 %v392_v31, %v383_v27  ;;  %v370_v47 = vadd.f32 %v366_v28, %v356_v39 }
 0x16e   : > { %837 = vrot.lane.b32.xlu0 %v833_v32, %s1269_s16  ;;  %811 = vrot.lane.b32.xlu1 %v806_v34, %s1267_s24  ;;  %s1035_s24 = sld [smem:[#allocation3 + $0x23]] }
 0x16f   : > { %v405_v40 = vadd.f32 %v403_v36, %v397_v37  ;;  %v586_v36 = vstv %s1028_s6 }
 0x170   : > { %v380_v41 = vpop.permute.xlu1 %379  ;;  %v414_v42 = vpop.permute.xlu0 %413  ;;  %v494_v9 = vstv %s1021_s5 }
 0x171   : > { %v384_v1 = vadd.f32 %v380_v41, %v370_v47  ;;  %v419_v59 = vadd.f32 %v414_v42, %v405_v40  ;;  %v495_v12 = vmul.f32 %v494_v9, %v1547_v21  ;;  %v496_v33 = vmul.f32 %v494_v9, %v1557_v30 }
 0x172   : > { %851 = vrot.lane.b32.xlu0 %v847_v44, %s1270_s25  ;;  %825 = vrot.lane.b32.xlu1 %v820_v46, %s1268_s8  ;;  %v587_v30 = vmul.f32 %v586_v36, %v1575_v43  ;;  %s1042_s8 = sld [smem:[#allocation3 + $0x2a]] }
 0x174   : > { %v394_v48 = vpop.permute.xlu1 %393  ;;  %v428_v49 = vpop.permute.xlu0 %427 }
 0x175   : > { %v398_v54 = vadd.f32 %v394_v48, %v384_v1  ;;  %v433_v62 = vadd.f32 %v428_v49, %v419_v59 }
 0x176   : > { %839 = vrot.lane.b32.xlu1 %v834_v50, %s1269_s16  ;;  %s1049_s16 = sld [smem:[#allocation3 + $0x31]] }
 0x177   : > { %v406_v55 = vadd.f32 %v404_v51, %v398_v54 }
 0x178   : > { %v416_v56 = vpop.permute.xlu1 %415  ;;  %v442_v58 = vpop.permute.xlu0 %441 }
 0x179   : > { %v447_v63 = vadd.f32 %v442_v58, %v433_v62  ;;  %v420_v5 = vadd.f32 %v416_v56, %v406_v55  ;;  %v588_v55 = vmul.f32 %v586_v36, %v1585_v52 }
 0x17a   : > { %853 = vrot.lane.b32.xlu1 %v848_v45, %s1270_s25  ;;  %s173_s25 = scalar_lea.vmem [#allocation8], %s999_s3 }
 0x17b   : > { %s905_s27 = sshll.u32 %s173_s25, 4  ;;  %s1743_s27 = int_to_ptr.vmem [resolvable:$true] %s905_s27 }
 0x17c   : > { %v430_v60 = vpop.permute.xlu1 %429  ;;  %v456_v61 = vpop.permute.xlu0 %455  ;;  %s1187_s3 = scalar_lea.vmem %s1743_s27, 1024  ;;  %p1194_p6 = scmp.lt.s32.totalorder %s1743_s27, %s1192_s19 }
 0x17d   : > { %v461_v4 = vadd.f32 %v456_v61, %v447_v63  ;;  %v434_v10 = vadd.f32 %v430_v60, %v420_v5  ;;  %p1188_p12 = scmp.ne.s32.totalorder %s1743_s27, %s1187_s3  ;;  %p1195_p4 = scmp.lt.s32.totalorder %s1193_s29, %s1187_s3 }
 0x17f   : > { %p1189_p7 = pnand %p1188_p12, %p1811_p13  ;;  %p1196_p5 = por %p1195_p4, %p1194_p6 }
 0x180   : > { %v444_v0 = vpop.permute.xlu1 %443  ;;  %v470_v2 = vpop.permute.xlu0 %469 }
 0x181   : > { %v475_v6 = vadd.f32 %v470_v2, %v461_v4  ;;  %v448_v13 = vadd.f32 %v444_v0, %v434_v10  ;;  %v678_v4 = vstv %s1035_s24  ;;  %p1190_p3 = pneg %p1189_p7 }
 0x182   : > { %v679_v52 = vmul.f32 %v678_v4, %v1613_v3 }
 0x183   : > { %p1197_p0 = pnand %p1196_p5, %p1190_p3 }
 0x184   : > { %v458_v7 = vpop.permute.xlu1 %457  ;;  %v484_v8 = vpop.permute.xlu0 %483 }
 0x185   : > { %v489_v53 = vadd.f32 %v484_v8, %v475_v6  ;;  %v462_v16 = vadd.f32 %v458_v7, %v448_v13 }
 0x187   : > { %v497_v14 = vadd.f32 %v495_v12, %v489_v53 }
 0x188   : > { %v472_v15 = vpop.permute.xlu1 %471  ;;  %v506_v29 = vpop.permute.xlu0 %505 }
 0x189   : > { %v476_v17 = vadd.f32 %v472_v15, %v462_v16  ;;  %v511_v26 = vadd.f32 %v506_v29, %v497_v14 }
 0x18c   : > { %v486_v18 = vpop.permute.xlu1 %485  ;;  %v520_v19 = vpop.permute.xlu0 %519 }
 0x18d   : > { %v490_v20 = vadd.f32 %v486_v18, %v476_v17  ;;  %v525_v31 = vadd.f32 %v520_v19, %v511_v26  ;;  %v680_v19 = vmul.f32 %v678_v4, %v1632_v22 }
 0x18f   : > { %v498_v23 = vadd.f32 %v496_v33, %v490_v20 }
 0x190   : > { %v508_v24 = vpop.permute.xlu1 %507  ;;  %v534_v25 = vpop.permute.xlu0 %533 }
 0x191   : > { %v539_v21 = vadd.f32 %v534_v25, %v525_v31  ;;  %v512_v37 = vadd.f32 %v508_v24, %v498_v23 }
 0x194   : > { %v522_v27 = vpop.permute.xlu1 %521  ;;  %v548_v28 = vpop.permute.xlu0 %547 }
 0x195   : > { %v553_v35 = vadd.f32 %v548_v28, %v539_v21  ;;  %v526_v41 = vadd.f32 %v522_v27, %v512_v37 }
 0x198   : > { %v536_v32 = vpop.permute.xlu1 %535  ;;  %v562_v34 = vpop.permute.xlu0 %561 }
 0x199   : > { %v567_v38 = vadd.f32 %v562_v34, %v553_v35  ;;  %v540_v44 = vadd.f32 %v536_v32, %v526_v41  ;;  %v770_v32 = vstv %s1042_s8 }
 0x19a   : > { %v771_v22 = vmul.f32 %v770_v32, %v1665_v57 }
 0x19c   : > { %v550_v39 = vpop.permute.xlu1 %549  ;;  %v576_v40 = vpop.permute.xlu0 %575 }
 0x19d   : > { %v581_v42 = vadd.f32 %v576_v40, %v567_v38  ;;  %v554_v48 = vadd.f32 %v550_v39, %v540_v44 }
 0x19f   : > { %v589_v46 = vadd.f32 %v587_v30, %v581_v42 }
 0x1a0   : > { %v564_v47 = vpop.permute.xlu1 %563  ;;  %v598_v1 = vpop.permute.xlu0 %597 }
 0x1a1   : > { %v568_v49 = vadd.f32 %v564_v47, %v554_v48  ;;  %v603_v59 = vadd.f32 %v598_v1, %v589_v46 }
 0x1a4   : > { %v578_v50 = vpop.permute.xlu1 %577  ;;  %v612_v51 = vpop.permute.xlu0 %611 }
 0x1a5   : > { %v582_v54 = vadd.f32 %v578_v50, %v568_v49  ;;  %v617_v62 = vadd.f32 %v612_v51, %v603_v59  ;;  %v772_v49 = vmul.f32 %v770_v32, %v1683_v11  ;;  %v1142_v32 = vld [vmem:[%s1427_s26 + $0x28] sm:$0xff] }
 0x1a7   : > { %v590_v56 = vadd.f32 %v588_v55, %v582_v54 }
 0x1a8   : > { %v600_v58 = vpop.permute.xlu1 %599  ;;  %v626_v45 = vpop.permute.xlu0 %625 }
 0x1a9   : > { %v631_v43 = vadd.f32 %v626_v45, %v617_v62  ;;  %v604_v9 = vadd.f32 %v600_v58, %v590_v56 }
 0x1ac   : > { %v614_v60 = vpop.permute.xlu1 %613  ;;  %v640_v61 = vpop.permute.xlu0 %639 }
 0x1ad   : > { %v645_v2 = vadd.f32 %v640_v61, %v631_v43  ;;  %v618_v8 = vadd.f32 %v614_v60, %v604_v9 }
 0x1b0   : > { %v628_v63 = vpop.permute.xlu1 %627  ;;  %v654_v0 = vpop.permute.xlu0 %653 }
 0x1b1   : > { %v659_v5 = vadd.f32 %v654_v0, %v645_v2  ;;  %v632_v53 = vadd.f32 %v628_v63, %v618_v8  ;;  %v860_v0 = vstv %s1049_s16 }
 0x1b4   : > { %v642_v6 = vpop.permute.xlu1 %641  ;;  %v668_v7 = vpop.permute.xlu0 %667 }
 0x1b5   : > { %v673_v10 = vadd.f32 %v668_v7, %v659_v5  ;;  %v646_v15 = vadd.f32 %v642_v6, %v632_v53 }
 0x1b7   : > { %v681_v12 = vadd.f32 %v679_v52, %v673_v10 }
 0x1b8   : > { %v656_v13 = vpop.permute.xlu1 %655  ;;  %v690_v14 = vpop.permute.xlu0 %689 }
 0x1b9   : > { %v660_v29 = vadd.f32 %v656_v13, %v646_v15  ;;  %v695_v24 = vadd.f32 %v690_v14, %v681_v12 }
 0x1bc   : > { %v670_v16 = vpop.permute.xlu1 %669  ;;  %v704_v17 = vpop.permute.xlu0 %703 }
 0x1bd   : > { %v674_v18 = vadd.f32 %v670_v16, %v660_v29  ;;  %v709_v27 = vadd.f32 %v704_v17, %v695_v24 }
 0x1bf   : > { %v682_v20 = vadd.f32 %v680_v19, %v674_v18  ;;  %v1136_v18 = vld [vmem:[%s1427_s26] sm:$0xff] }
 0x1c0   : > { %v692_v33 = vpop.permute.xlu1 %691  ;;  %v718_v23 = vpop.permute.xlu0 %717 }
 0x1c1   : > { %v723_v3 = vadd.f32 %v718_v23, %v709_v27  ;;  %v696_v34 = vadd.f32 %v692_v33, %v682_v20  ;;  %v1137_v20 = vld [vmem:[%s1427_s26 + $0x10] sm:$0xff]  ;;  %v1138_v23 = vld [vmem:[%s1427_s26 + $0x20] sm:$0xff] }
 0x1c4   : > { %v706_v25 = vpop.permute.xlu1 %705  ;;  %v732_v26 = vpop.permute.xlu0 %731 }
 0x1c5   : > { %v737_v21 = vadd.f32 %v732_v26, %v723_v3  ;;  %v710_v38 = vadd.f32 %v706_v25, %v696_v34  ;;  %v1139_v25 = vld [vmem:[%s1427_s26 + $0x30] sm:$0xff]  ;;  %v1140_v3 = vld [vmem:[%s1427_s26 + $0x8] sm:$0xff] }
 0x1c8   : > { %v720_v28 = vpop.permute.xlu1 %719  ;;  %v746_v31 = vpop.permute.xlu0 %745 }
 0x1c9   : > { %v751_v35 = vadd.f32 %v746_v31, %v737_v21  ;;  %v724_v40 = vadd.f32 %v720_v28, %v710_v38  ;;  %v1141_v31 = vld [vmem:[%s1427_s26 + $0x18] sm:$0xff] }
 0x1cc   : > { %v734_v36 = vpop.permute.xlu1 %733  ;;  %v760_v37 = vpop.permute.xlu0 %759 }
 0x1cd   : > { %v765_v39 = vadd.f32 %v760_v37, %v751_v35  ;;  %v738_v44 = vadd.f32 %v734_v36, %v724_v40  ;;  %v1143_v35 = vld [vmem:[%s1427_s26 + $0x38] sm:$0xff] }
 0x1cf   : > { %v773_v41 = vadd.f32 %v771_v22, %v765_v39 }
 0x1d0   : > { %v748_v42 = vpop.permute.xlu1 %747  ;;  %v782_v30 = vpop.permute.xlu0 %781 }
 0x1d1   : > { %v752_v46 = vadd.f32 %v748_v42, %v738_v44  ;;  %v787_v55 = vadd.f32 %v782_v30, %v773_v41 }
 0x1d4   : > { %v762_v47 = vpop.permute.xlu1 %761  ;;  %v796_v1 = vpop.permute.xlu0 %795 }
 0x1d5   : > { %v766_v48 = vadd.f32 %v762_v47, %v752_v46  ;;  %v801_v45 = vadd.f32 %v796_v1, %v787_v55 }
 0x1d7   : > { %v774_v50 = vadd.f32 %v772_v49, %v766_v48 }
 0x1d8   : > { %v784_v51 = vpop.permute.xlu1 %783  ;;  %v810_v54 = vpop.permute.xlu0 %809 }
 0x1d9   : > { %v815_v57 = vadd.f32 %v810_v54, %v801_v45  ;;  %v788_v62 = vadd.f32 %v784_v51, %v774_v50 }
 0x1dc   : > { %v798_v56 = vpop.permute.xlu1 %797  ;;  %v824_v58 = vpop.permute.xlu0 %823 }
 0x1dd   : > { %v829_v61 = vadd.f32 %v824_v58, %v815_v57  ;;  %v802_v4 = vadd.f32 %v798_v56, %v788_v62 }
 0x1e0   : > { %v812_v59 = vpop.permute.xlu1 %811  ;;  %v838_v60 = vpop.permute.xlu0 %837 }
 0x1e1   : > { %v843_v43 = vadd.f32 %v838_v60, %v829_v61  ;;  %v816_v11 = vadd.f32 %v812_v59, %v802_v4 }
 0x1e4   : > { %v826_v63 = vpop.permute.xlu1 %825  ;;  %v852_v2 = vpop.permute.xlu0 %851 }
 0x1e5   : > { %v857_v9 = vadd.f32 %v852_v2, %v843_v43  ;;  %v830_v7 = vadd.f32 %v826_v63, %v816_v11 }
 0x1e7   : > { %v861_v5 = vadd.f32 %v860_v0, %v857_v9 }
 0x1e8   : > { %v840_v6 = vpop.permute.xlu1 %839 }
 0x1e9   : > { %v1050_v8 = vmul.f32 -1.442695, %v861_v5  ;;  %v844_v10 = vadd.f32 %v840_v6, %v830_v7 }
 0x1eb   : > { %1128 = vpow2.f32 %v1050_v8 }
 0x1ec   : > { %v854_v52 = vpop.permute.xlu1 %853 }
 0x1ed   : > { %v858_v53 = vadd.f32 %v854_v52, %v844_v10 }
 0x1ef   : > { %v862_v12 = vadd.f32 %v860_v0, %v858_v53 }
 0x1f1   : > { %v1051_v13 = vmul.f32 -1.442695, %v862_v12 }
 0x1f3   : > { %1130 = vpow2.f32 %v1051_v13 }
 0x1f5   : > { %v1129_v14 = vpop.eup %1128 }
 0x1f6   : > { %v869_v15 = vadd.f32 1.0, %v1129_v14 }
 0x1f8   : > { %1132 = vrcp.f32 %v869_v15 }
 0x1fd   : > { %v1131_v29 = vpop.eup %1130 }
 0x1fe   : > { %v870_v16 = vadd.f32 1.0, %v1131_v29 }
 0x200   : > { %1134 = vrcp.f32 %v870_v16 }
 0x202   : > { %v1133_v17 = vpop.eup %1132 }
 0x203   : > { %v875_v19 = vmul.f32 %v1136_v18, %v1133_v17  ;;  %v877_v33 = vmul.f32 %v1137_v20, %v1133_v17  ;;  %v879_v24 = vmul.f32 %v1138_v23, %v1133_v17  ;;  %v881_v26 = vmul.f32 %v1139_v25, %v1133_v17 }
 0x205   : > { %883 = vst.msk [vmem:[%s173_s25] sm:$0xff] %vm182_vm0, %v875_v19  ;;  %885 = vst.msk [vmem:[%s173_s25 + $0x10] sm:$0xff] %vm182_vm0, %v877_v33 }
 0x206   : > { %887 = vst.msk [vmem:[%s173_s25 + $0x20] sm:$0xff] %vm182_vm0, %v879_v24  ;;  %889 = vst.msk [vmem:[%s173_s25 + $0x30] sm:$0xff] %vm182_vm0, %v881_v26 }
 0x20a   : > { %v1135_v27 = vpop.eup %1134 }
 0x20b   : > { %v876_v28 = vmul.f32 %v1140_v3, %v1135_v27  ;;  %v878_v21 = vmul.f32 %v1141_v31, %v1135_v27  ;;  %v880_v34 = vmul.f32 %v1142_v32, %v1135_v27  ;;  %v882_v36 = vmul.f32 %v1143_v35, %v1135_v27 }
 0x20d   : > { %884 = vst.msk [vmem:[%s173_s25 + $0x8] sm:$0xff] %vm182_vm0, %v876_v28  ;;  %886 = vst.msk [vmem:[%s173_s25 + $0x18] sm:$0xff] %vm182_vm0, %v878_v21 }
 0x20e   : > { %888 = vst.msk [vmem:[%s173_s25 + $0x28] sm:$0xff] %vm182_vm0, %v880_v34  ;;  %890 = vst.msk [vmem:[%s173_s25 + $0x38] sm:$0xff] %vm182_vm0, %v882_v36 }
 0x20f   : > { %1200 = shalt.err (!%p1197_p0)
}
 0x210   : > { %s1201_s26 = scalar_lea.hbm %s1741_s20, 1024  ;;  %s1205_s5 = scalar_lea.hbm %s1797_s2, 2048 }
 0x211   : > { %p1202_p8 = scmp.ne.s32.totalorder %s1741_s20, %s1201_s26  ;;  %p1206_p1 = scmp.lt.u32.totalorder %s1741_s20, %s1797_s2 }
 0x212   : > { %p1207_p2 = scmp.lt.u32.totalorder %s1205_s5, %s1201_s26  ;;  %p1209_p12 = scmp.lt.u32.totalorder %s1201_s26, %s1741_s20 }
 0x213   : > { %p1203_p9 = pnand %p1202_p8, %p1811_p13 }
 0x214   : > { %p1208_p11 = por %p1207_p2, %p1206_p1 }
 0x215   : > { %p1204_p10 = pneg %p1203_p9 }
 0x216   : > { %p1210_p7 = por %p1209_p12, %p1208_p11 }
 0x218   : > { %p1211_p3 = pnand %p1210_p7, %p1204_p10 }
 0x21a   : > { %1214 = shalt.err (!%p1211_p3)
}
 0x21b   : > { %s1272_s8 = smov 128   ;;  %s1273_s16 = smov 8  }
 0x21c   : > { %1065 = dma.vmem_to_hbm [thread:$0]  (%p1811_p13), %s1743_s27, 1024, %s1741_s20, %s892_s13, %s1272_s8, %s1272_s8, %s1273_s16  }
 0x21d PF: > { %s920_s25 = sand.u32 1, %s1245_s9   ;;  %p1812_p6 = scmp.ne.s32.totalorder %s1804_s22, 0 }
 0x21e   : > { %p1813_p4 = scmp.ge.s32.totalorder %s1257_s12, 2  ;;  %s921_s7 = scalar_lea.sflag [#allocation5], %s920_s25 }
 0x220   : > { %p1076_p5 = pnand %p1813_p4, %p1812_p6 }
 0x222   : > { %1240 = dma.done.wait (!%p1076_p5), %s921_s7, 1024  }
 0x223   : > { %1242 = vsyncadd (!%p1076_p5), %s921_s7, 4294966272  ;;  %p16_p0 = scmp.ge.s32.totalorder %s1314_s15, 4   ;;  %s1814_s9 = smov %s1249_s10 }
 0x224   : > { %s1815_s10 = smov %s1253_s11  ;;  %s1816_s11 = smov %s1326_s18 }
 0x225   : > { %s1817_s12 = smov %s1314_s15  ;;  %18 = sbr.rel (!%p16_p0) target bundleno = 6 (0x6), region = 78 }
 0x22c   :  { %926 = vsyncpa [#allocation4], 1 }
 0x22d   :  { %928 = vsyncpa [#allocation4 + $0x1], 1 }
 0x22e   :  { %929 = vsyncpa [#allocation5], 1 }
 0x22f   :  { %931 = vsyncpa [#allocation5 + $0x1], 1 }
 0x230   :  { %932 = vsyncpa [#allocation6], 1 }
 0x231   :  { %934 = vsyncpa [#allocation6 + $0x1], 1 }

</bundles_post_ra>
